<compile_context>
chip_gen: v7x
topology: tpu7x:2x2x1
jax: 0.10.0
libtpu: 0.0.40
codegen_flags: <defaults>
</compile_context>

<pallas_src>
import functools

import jax
import jax.numpy as jnp
import numpy as np
from jax.experimental import pallas as pl
from jax.experimental.pallas import tpu as pltpu


def _round_up(x, m):
    return (x + m - 1) // m * m


# ----------------------------- Pallas kernel ------------------------------- #
def _bilstm_dir_kernel(
    lens_ref,      # (B, 1) int32 sequence lengths
    gates_ref,     # (1, TB, B, 4H) pre-computed x @ W_ih^T + b_ih + b_hh for this
                   #                direction, stored in recurrence order
    whh_ref,       # (1, H, 4H)     recurrent weight for this direction (f32/bf16)
    out_ref,       # (1, TB, B, H)  hidden states in recurrence order (f32)
    state,         # VMEM scratch (2, 2, B, H) f32: [direction, (h, c), B, H]
    *, seq_len_padded, time_block,
):
    d = pl.program_id(0)           # direction: 0 = forward, 1 = backward
    c = pl.program_id(1)           # time-chunk index (recurrence order)
    TB = time_block
    H = whh_ref.shape[1]
    B = out_ref.shape[2]

    @pl.when(c == 0)
    def _init():
        state[d] = jnp.zeros((2, B, H), dtype=state.dtype)

    lens = lens_ref[...]           # (B, 1) int32
    w_hh = whh_ref[0]              # (H, 4H) in matmul dtype
    mm_dtype = w_hh.dtype

    hc = state[d]                  # (2, B, H) f32, carried across chunks
    h, c_st = hc[0], hc[1]

    for j in range(TB):            # static unroll (TB <= 32)
        s = c * TB + j             # recurrence step index
        # Global time of this step: s for forward, T_pad-1-s for backward.
        t = jnp.where(d == 0, s, seq_len_padded - 1 - s)

        # Only the small recurrent matmul sits on the serial path; input
        # projection + both biases are already folded into the pre-gates.
        pre = gates_ref[0, j].astype(jnp.float32)                       # (B, 4H)
        gates = pre + jnp.dot(h.astype(mm_dtype), w_hh,
                              preferred_element_type=jnp.float32)
        # PyTorch LSTM gate order: i, f, g, o (lane-aligned when H % 128 == 0).
        i_g = jax.nn.sigmoid(gates[:, 0 * H:1 * H])
        f_g = jax.nn.sigmoid(gates[:, 1 * H:2 * H])
        g_g = jnp.tanh(gates[:, 2 * H:3 * H])
        o_g = jax.nn.sigmoid(gates[:, 3 * H:4 * H])
        c_new = f_g * c_st + i_g * g_g
        h_new = o_g * jnp.tanh(c_new)

        m = t < lens                                 # (B, 1) packed-seq mask
        h = jnp.where(m, h_new, h)
        c_st = jnp.where(m, c_new, c_st)
        # Full (B, H) tile store: unmasked, lane-dense when B % 8 == 0 and
        # H % 128 == 0 (time-major output; one epilogue transpose in XLA).
        out_ref[0, j] = jnp.where(m, h_new, 0.0).astype(out_ref.dtype)

    state[d] = jnp.stack([h, c_st])


# ------------------------------ Wrapper ------------------------------------ #
def seq2seq_encoder(sequences_batch, sequences_lengths, params, *,
                    time_block=None,
                    matmul_dtype=jnp.float32,     # bf16 recommended on v5e/v6e/v7x
                    gates_dtype=jnp.float32,      # bf16 halves pre-gate HBM traffic
                    single_buffer_weights=False): # enable for very large H on v7x
    """Bidirectional LSTM encoder (batch_first).

    sequences_batch: (B, T, D) float32, sequences_lengths: (B,) int32.
    Returns (B, T, 2H) float32 (zeros at t >= length, as packed semantics imply).
    """
    B, T, D = sequences_batch.shape
    H = params["weight_hh_f"].shape[1]

    if time_block is None:
        t8 = _round_up(T, 8)
        time_block = 8
        for tb in (32, 16):        # largest block wasting <= 25% padded steps
            if tb <= t8 and (_round_up(T, tb) - T) * 4 <= T:
                time_block = tb
                break
    TB = int(time_block)
    T_pad = _round_up(T, TB)
    num_chunks = T_pad // TB

    # ---- Hoisted input projection: one batched GEMM for both directions ----
    x_tm = jnp.transpose(sequences_batch, (1, 0, 2)).astype(jnp.float32)   # (T, B, D)
    if T_pad != T:
        x_tm = jnp.pad(x_tm, ((0, T_pad - T), (0, 0), (0, 0)))
    # dir 0: natural time order; dir 1: recurrence (time-reversed) order.
    x_stack = jnp.stack([x_tm, x_tm[::-1]], axis=0)                        # (2,Tp,B,D)
    w_ih = jnp.stack([params["weight_ih_f"].T, params["weight_ih_b"].T])   # (2, D, 4H)
    b = jnp.stack([params["bias_ih_f"] + params["bias_hh_f"],
                   params["bias_ih_b"] + params["bias_hh_b"]])             # (2, 4H)
    pre = jnp.einsum("dtbi,dio->dtbo", x_stack, w_ih,
                     precision=jax.lax.Precision.HIGHEST)
    pre = (pre + b[:, None, None, :]).astype(gates_dtype)                  # (2,Tp,B,4H)

    whh = jnp.stack([params["weight_hh_f"].T,
                     params["weight_hh_b"].T]).astype(matmul_dtype)        # (2, H, 4H)
    lens2 = sequences_lengths.reshape(B, 1).astype(jnp.int32)

    def _spec(shape, index_map, *, buffers=None):
        # Optionally single-buffer grid-invariant operands (large-H / v7x VMEM).
        if buffers is not None:
            try:
                return pl.BlockSpec(shape, index_map,
                                    pipeline_mode=pl.Buffered(buffers))
            except (TypeError, AttributeError):
                pass
        return pl.BlockSpec(shape, index_map)

    wbuf = 1 if single_buffer_weights else None
    in_specs = [
        _spec((B, 1), lambda d, c: (0, 0), buffers=wbuf),                     # lengths
        pl.BlockSpec((1, TB, B, 4 * H), lambda d, c: (d, c, 0, 0)),           # pre-gates
        _spec((1, H, 4 * H), lambda d, c: (d, 0, 0), buffers=wbuf),           # W_hh
    ]
    out_specs = pl.BlockSpec((1, TB, B, H), lambda d, c: (d, c, 0, 0))

    # Explicit scoped-VMEM limit (working-set estimate + headroom).
    gsz = jnp.dtype(gates_dtype).itemsize
    wsz = jnp.dtype(matmul_dtype).itemsize
    est = (2 * TB * B * 4 * H * gsz          # pre-gate blocks (double buffered)
           + 2 * TB * B * H * 4              # output blocks
           + 2 * H * 4 * H * wsz             # recurrent weight block(s)
           + 2 * B * 128 * 4                 # lengths (lane padded)
           + 2 * 2 * B * H * 4               # h/c state scratch
           + (4 << 20))                      # headroom
    vmem_limit = int(min(100 << 20, max(32 << 20, est)))

    kernel = functools.partial(_bilstm_dir_kernel,
                               seq_len_padded=T_pad, time_block=TB)

    out = pl.pallas_call(
        kernel,
        out_shape=jax.ShapeDtypeStruct((2, T_pad, B, H), jnp.float32),
        grid_spec=pltpu.PrefetchScalarGridSpec(
            num_scalar_prefetch=0,
            grid=(2, num_chunks),             # (direction, time-chunk)
            in_specs=in_specs,
            out_specs=out_specs,
            scratch_shapes=[pltpu.VMEM((2, 2, B, H), jnp.float32)],
        ),
        compiler_params=pltpu.CompilerParams(
            # direction axis parallel (2 TCs on v7x); recurrence axis arbitrary.
            dimension_semantics=("parallel", "arbitrary"),
            vmem_limit_bytes=vmem_limit,
        ),
    )(lens2, pre, whh)

    # Single fused epilogue pass: un-reverse bwd, drop padding, concat, to
    # batch-first.  (Replaces the previous concat; in-kernel stores are now
    # full unmasked tiles.)
    of = out[0, :T]                     # (T, B, H), natural time order
    ob = out[1][::-1][:T]               # (T, B, H), natural time order
    res = jnp.concatenate([of, ob], axis=-1)      # (T, B, 2H)
    return jnp.transpose(res, (1, 0, 2))          # (B, T, 2H)


# --------------------- Deterministic parameter init ------------------------ #
def init_params(key, input_size, hidden_size):
    # Mirrors PyTorch nn.LSTM init: U(-1/sqrt(H), 1/sqrt(H)) for all params.
    bound = 1.0 / np.sqrt(hidden_size)
    keys = jax.random.split(key, 8)
    u = lambda kk, shape: jax.random.uniform(kk, shape, jnp.float32, -bound, bound)
    H, D = hidden_size, input_size
    return {
        "weight_ih_f": u(keys[0], (4 * H, D)),
        "weight_hh_f": u(keys[1], (4 * H, H)),
        "bias_ih_f": u(keys[2], (4 * H,)),
        "bias_hh_f": u(keys[3], (4 * H,)),
        "weight_ih_b": u(keys[4], (4 * H, D)),
        "weight_hh_b": u(keys[5], (4 * H, H)),
        "bias_ih_b": u(keys[6], (4 * H,)),
        "bias_hh_b": u(keys[7], (4 * H,)),
    }


# -------------------------- Pure-JAX reference ------------------------------ #
def reference_encoder(x, lengths, params):
    B, T, D = x.shape
    H = params["weight_hh_f"].shape[1]
    hi = jax.lax.Precision.HIGHEST

    def run_dir(wih, whh, bih, bhh, reverse):
        wihT, whhT, b = wih.T, whh.T, bih + bhh

        def step(carry, inp):
            h, c = carry
            x_t, t = inp
            gates = (jnp.dot(x_t, wihT, precision=hi)
                     + jnp.dot(h, whhT, precision=hi) + b)
            i = jax.nn.sigmoid(gates[:, :H])
            f = jax.nn.sigmoid(gates[:, H:2 * H])
            g = jnp.tanh(gates[:, 2 * H:3 * H])
            o = jax.nn.sigmoid(gates[:, 3 * H:])
            c_new = f * c + i * g
            h_new = o * jnp.tanh(c_new)
            mask = (t < lengths)[:, None]
            h = jnp.where(mask, h_new, h)
            c = jnp.where(mask, c_new, c)
            out = jnp.where(mask, h_new, 0.0)
            return (h, c), out

        ts = jnp.arange(T)
        xs = jnp.transpose(x, (1, 0, 2))
        if reverse:
            ts, xs = ts[::-1], xs[::-1]
        (_, _), outs = jax.lax.scan(
            step, (jnp.zeros((B, H), jnp.float32), jnp.zeros((B, H), jnp.float32)),
            (xs, ts))
        if reverse:
            outs = outs[::-1]
        return jnp.transpose(outs, (1, 0, 2))

    of = run_dir(params["weight_ih_f"], params["weight_hh_f"],
                 params["bias_ih_f"], params["bias_hh_f"], reverse=False)
    ob = run_dir(params["weight_ih_b"], params["weight_hh_b"],
                 params["bias_ih_b"], params["bias_hh_b"], reverse=True)
    return jnp.concatenate([of, ob], axis=-1)


# --------------------------------- Main ------------------------------------ #
if __name__ == "__main__":
    # B multiple of 8 (sublanes), H multiple of 128 (lane-dense full-tile
    # stores); T = 20 with time_block = 8 exercises padding (T_pad = 24) and
    # the chunk-carried recurrent state.
    B, T, D, H = 8, 20, 64, 128

    key = jax.random.PRNGKey(0)
    k_x, k_p = jax.random.split(key)
    x = jax.random.normal(k_x, (B, T, D), dtype=jnp.float32)
    lengths = jnp.array([20, 13, 7, 3, 20, 9, 5, 16], dtype=jnp.int32)  # max == T
    params = init_params(k_p, D, H)

    ref = jax.block_until_ready(reference_encoder(x, lengths, params))

    # float32 everywhere (reference-accurate path), 3 time chunks.
    enc = jax.jit(functools.partial(seq2seq_encoder, time_block=8))
    out = jax.block_until_ready(enc(x, lengths, params))
    assert out.shape == (B, T, 2 * H), out.shape
    np.testing.assert_allclose(np.asarray(out), np.asarray(ref), rtol=1e-2, atol=1e-2)

    # Reduced-precision production config: bf16 recurrent weights + bf16
    # pre-gate stream (recommended on v5e, v6e and v7x); f32 state/activations.
    enc_bf16 = jax.jit(functools.partial(seq2seq_encoder,
                                         matmul_dtype=jnp.bfloat16,
                                         gates_dtype=jnp.bfloat16))
    out_bf16 = jax.block_until_ready(enc_bf16(x, lengths, params))
    np.testing.assert_allclose(np.asarray(out_bf16), np.asarray(ref),
                               rtol=1e-1, atol=1e-1)

    # TODO(synk): pad_packed_sequence trims the output time axis to
    # max(lengths); here the output keeps static length T (zeros past length).
    print("KERNEL_OK")
</pallas_src>

<mosaic_0001>
module attributes {stable_mosaic.version = 11 : i64} {
  func.func @_bilstm_dir_kernel(%arg0: i32, %arg1: i32, %arg2: memref<8x1xi32, #tpu.memory_space<vmem>>, %arg3: memref<1x8x8x512xf32, #tpu.memory_space<vmem>>, %arg4: memref<1x128x512xf32, #tpu.memory_space<vmem>>, %arg5: memref<1x8x8x128xf32, #tpu.memory_space<vmem>>, %arg6: memref<2x2x8x128xf32, #tpu.memory_space<vmem>>) attributes {dimension_semantics = [#tpu.dimension_semantics<parallel>, #tpu.dimension_semantics<arbitrary>], iteration_bounds = array<i64: 2, 3>, scalar_prefetch = 0 : i64, scratch_operands = 1 : i64, tpu.core_type = #tpu.core_type<tc>, window_params = [{pipeline_mode = #tpu.pipeline_mode<synchronous>, transform_indices = @transform_0, window_bounds = array<i64: 8, 1>}, {transform_indices = @transform_1, window_bounds = array<i64: 1, 8, 8, 512>}, {transform_indices = @transform_2, window_bounds = array<i64: 1, 128, 512>}, {transform_indices = @transform_3, window_bounds = array<i64: 1, 8, 8, 128>}]} {
    %c0_i32 = arith.constant 0 : i32
    %0 = arith.cmpi eq, %arg1, %c0_i32 : i32
    %1 = arith.extui %0 : i1 to i32
    %c0_i32_0 = arith.constant 0 : i32
    %2 = arith.cmpi ne, %1, %c0_i32_0 : i32
    scf.if %2 {
      %cst_130 = arith.constant 0.000000e+00 : f32
      %412 = vector.broadcast %cst_130 : f32 to vector<2x8x128xf32>
      %413 = arith.index_cast %arg0 : i32 to index
      %c0_131 = arith.constant 0 : index
      %c0_132 = arith.constant 0 : index
      %c0_133 = arith.constant 0 : index
      %414 = vector.load %arg6[%413, %c0_131, %c0_132, %c0_133] : memref<2x2x8x128xf32, #tpu.memory_space<vmem>>, vector<1x2x8x128xf32>
      %415 = vector.shape_cast %414 : vector<1x2x8x128xf32> to vector<2x8x128xf32>
      %416 = vector.shape_cast %412 : vector<2x8x128xf32> to vector<1x2x8x128xf32>
      tpu.vector_store %arg6[%413, %c0_131, %c0_132, %c0_133], %416 {strides = array<i32>} : memref<2x2x8x128xf32, #tpu.memory_space<vmem>>, vector<1x2x8x128xf32>,
    } else {
    }
    %c0 = arith.constant 0 : index
    %c0_1 = arith.constant 0 : index
    %3 = vector.load %arg2[%c0, %c0_1] : memref<8x1xi32, #tpu.memory_space<vmem>>, vector<8x1xi32>
    %c0_2 = arith.constant 0 : index
    %c0_3 = arith.constant 0 : index
    %c0_4 = arith.constant 0 : index
    %4 = vector.load %arg4[%c0_2, %c0_3, %c0_4] : memref<1x128x512xf32, #tpu.memory_space<vmem>>, vector<1x128x512xf32>
    %5 = vector.shape_cast %4 : vector<1x128x512xf32> to vector<128x512xf32>
    %6 = arith.index_cast %arg0 : i32 to index
    %c0_5 = arith.constant 0 : index
    %c0_6 = arith.constant 0 : index
    %c0_7 = arith.constant 0 : index
    %7 = vector.load %arg6[%6, %c0_5, %c0_6, %c0_7] : memref<2x2x8x128xf32, #tpu.memory_space<vmem>>, vector<1x2x8x128xf32>
    %8 = vector.shape_cast %7 : vector<1x2x8x128xf32> to vector<2x8x128xf32>
    %9 = vector.extract_strided_slice %8 {offsets = [0, 0, 0], sizes = [1, 8, 128], strides = [1, 1, 1]} : vector<2x8x128xf32> to vector<1x8x128xf32>
    %10 = vector.shape_cast %9 : vector<1x8x128xf32> to vector<8x128xf32>
    %11 = vector.extract_strided_slice %8 {offsets = [1, 0, 0], sizes = [1, 8, 128], strides = [1, 1, 1]} : vector<2x8x128xf32> to vector<1x8x128xf32>
    %12 = vector.shape_cast %11 : vector<1x8x128xf32> to vector<8x128xf32>
    %c8_i32 = arith.constant 8 : i32
    %13 = arith.muli %arg1, %c8_i32 : i32
    %c0_i32_8 = arith.constant 0 : i32
    %14 = arith.addi %13, %c0_i32_8 : i32
    %c0_i32_9 = arith.constant 0 : i32
    %15 = arith.cmpi eq, %arg0, %c0_i32_9 : i32
    %c23_i32 = arith.constant 23 : i32
    %16 = arith.subi %c23_i32, %14 : i32
    %17 = arith.select %15, %14, %16 : i32
    %c0_10 = arith.constant 0 : index
    %c0_11 = arith.constant 0 : index
    %c0_12 = arith.constant 0 : index
    %c0_13 = arith.constant 0 : index
    %18 = vector.load %arg3[%c0_10, %c0_11, %c0_12, %c0_13] : memref<1x8x8x512xf32, #tpu.memory_space<vmem>>, vector<1x1x8x512xf32>
    %19 = vector.shape_cast %18 : vector<1x1x8x512xf32> to vector<8x512xf32>
    %cst = arith.constant dense<0.000000e+00> : vector<8x512xf32>
    %20 = tpu.matmul %10, %5, %cst {dimension_numbers = #tpu.dot_dimension_numbers<[1], [0], [0], [1], [0, 0, 1, 1], [], []>} : vector<8x128xf32>, vector<128x512xf32>, vector<8x512xf32> -> vector<8x512xf32>
    %21 = arith.addf %19, %20 : vector<8x512xf32>
    %22 = vector.extract_strided_slice %21 {offsets = [0, 0], sizes = [8, 128], strides = [1, 1]} : vector<8x512xf32> to vector<8x128xf32>
    %23 = arith.negf %22 : vector<8x128xf32>
    %24 = math.exp %23 : vector<8x128xf32>
    %cst_14 = arith.constant 1.000000e+00 : f32
    %25 = vector.broadcast %cst_14 : f32 to vector<8x128xf32>
    %26 = arith.addf %25, %24 : vector<8x128xf32>
    %27 = arith.divf %25, %26 : vector<8x128xf32>
    %28 = vector.extract_strided_slice %21 {offsets = [0, 128], sizes = [8, 128], strides = [1, 1]} : vector<8x512xf32> to vector<8x128xf32>
    %29 = arith.negf %28 : vector<8x128xf32>
    %30 = math.exp %29 : vector<8x128xf32>
    %cst_15 = arith.constant 1.000000e+00 : f32
    %31 = vector.broadcast %cst_15 : f32 to vector<8x128xf32>
    %32 = arith.addf %31, %30 : vector<8x128xf32>
    %33 = arith.divf %31, %32 : vector<8x128xf32>
    %34 = vector.extract_strided_slice %21 {offsets = [0, 256], sizes = [8, 128], strides = [1, 1]} : vector<8x512xf32> to vector<8x128xf32>
    %35 = math.tanh %34 : vector<8x128xf32>
    %36 = vector.extract_strided_slice %21 {offsets = [0, 384], sizes = [8, 128], strides = [1, 1]} : vector<8x512xf32> to vector<8x128xf32>
    %37 = arith.negf %36 : vector<8x128xf32>
    %38 = math.exp %37 : vector<8x128xf32>
    %cst_16 = arith.constant 1.000000e+00 : f32
    %39 = vector.broadcast %cst_16 : f32 to vector<8x128xf32>
    %40 = arith.addf %39, %38 : vector<8x128xf32>
    %41 = arith.divf %39, %40 : vector<8x128xf32>
    %42 = arith.mulf %33, %12 : vector<8x128xf32>
    %43 = arith.mulf %27, %35 : vector<8x128xf32>
    %44 = arith.addf %42, %43 : vector<8x128xf32>
    %45 = math.tanh %44 : vector<8x128xf32>
    %46 = arith.mulf %41, %45 : vector<8x128xf32>
    %47 = vector.broadcast %17 : i32 to vector<8x1xi32>
    %48 = arith.cmpi slt, %47, %3 : vector<8x1xi32>
    %49 = vector.shape_cast %48 : vector<8x1xi1> to vector<8x1xi1>
    %50 = vector.broadcast %49 : vector<8x1xi1> to vector<8x128xi1>
    %51 = arith.select %50, %46, %10 : vector<8x128xi1>, vector<8x128xf32>
    %52 = vector.shape_cast %48 : vector<8x1xi1> to vector<8x1xi1>
    %53 = vector.broadcast %52 : vector<8x1xi1> to vector<8x128xi1>
    %54 = arith.select %53, %44, %12 : vector<8x128xi1>, vector<8x128xf32>
    %cst_17 = arith.constant 0.000000e+00 : f32
    %55 = vector.shape_cast %48 : vector<8x1xi1> to vector<8x1xi1>
    %56 = vector.broadcast %55 : vector<8x1xi1> to vector<8x128xi1>
    %57 = vector.broadcast %cst_17 : f32 to vector<8x128xf32>
    %58 = arith.select %56, %46, %57 : vector<8x128xi1>, vector<8x128xf32>
    %c0_18 = arith.constant 0 : index
    %c0_19 = arith.constant 0 : index
    %c0_20 = arith.constant 0 : index
    %c0_21 = arith.constant 0 : index
    %59 = vector.load %arg5[%c0_18, %c0_19, %c0_20, %c0_21] : memref<1x8x8x128xf32, #tpu.memory_space<vmem>>, vector<1x1x8x128xf32>
    %60 = vector.shape_cast %59 : vector<1x1x8x128xf32> to vector<8x128xf32>
    %61 = vector.shape_cast %58 : vector<8x128xf32> to vector<1x1x8x128xf32>
    tpu.vector_store %arg5[%c0_18, %c0_19, %c0_20, %c0_21], %61 {strides = array<i32>} : memref<1x8x8x128xf32, #tpu.memory_space<vmem>>, vector<1x1x8x128xf32>,
    %c8_i32_22 = arith.constant 8 : i32
    %62 = arith.muli %arg1, %c8_i32_22 : i32
    %c1_i32 = arith.constant 1 : i32
    %63 = arith.addi %62, %c1_i32 : i32
    %c0_i32_23 = arith.constant 0 : i32
    %64 = arith.cmpi eq, %arg0, %c0_i32_23 : i32
    %c23_i32_24 = arith.constant 23 : i32
    %65 = arith.subi %c23_i32_24, %63 : i32
    %66 = arith.select %64, %63, %65 : i32
    %c0_25 = arith.constant 0 : index
    %c1 = arith.constant 1 : index
    %c0_26 = arith.constant 0 : index
    %c0_27 = arith.constant 0 : index
    %67 = vector.load %arg3[%c0_25, %c1, %c0_26, %c0_27] : memref<1x8x8x512xf32, #tpu.memory_space<vmem>>, vector<1x1x8x512xf32>
    %68 = vector.shape_cast %67 : vector<1x1x8x512xf32> to vector<8x512xf32>
    %cst_28 = arith.constant dense<0.000000e+00> : vector<8x512xf32>
    %69 = tpu.matmul %51, %5, %cst_28 {dimension_numbers = #tpu.dot_dimension_numbers<[1], [0], [0], [1], [0, 0, 1, 1], [], []>} : vector<8x128xf32>, vector<128x512xf32>, vector<8x512xf32> -> vector<8x512xf32>
    %70 = arith.addf %68, %69 : vector<8x512xf32>
    %71 = vector.extract_strided_slice %70 {offsets = [0, 0], sizes = [8, 128], strides = [1, 1]} : vector<8x512xf32> to vector<8x128xf32>
    %72 = arith.negf %71 : vector<8x128xf32>
    %73 = math.exp %72 : vector<8x128xf32>
    %cst_29 = arith.constant 1.000000e+00 : f32
    %74 = vector.broadcast %cst_29 : f32 to vector<8x128xf32>
    %75 = arith.addf %74, %73 : vector<8x128xf32>
    %76 = arith.divf %74, %75 : vector<8x128xf32>
    %77 = vector.extract_strided_slice %70 {offsets = [0, 128], sizes = [8, 128], strides = [1, 1]} : vector<8x512xf32> to vector<8x128xf32>
    %78 = arith.negf %77 : vector<8x128xf32>
    %79 = math.exp %78 : vector<8x128xf32>
    %cst_30 = arith.constant 1.000000e+00 : f32
    %80 = vector.broadcast %cst_30 : f32 to vector<8x128xf32>
    %81 = arith.addf %80, %79 : vector<8x128xf32>
    %82 = arith.divf %80, %81 : vector<8x128xf32>
    %83 = vector.extract_strided_slice %70 {offsets = [0, 256], sizes = [8, 128], strides = [1, 1]} : vector<8x512xf32> to vector<8x128xf32>
    %84 = math.tanh %83 : vector<8x128xf32>
    %85 = vector.extract_strided_slice %70 {offsets = [0, 384], sizes = [8, 128], strides = [1, 1]} : vector<8x512xf32> to vector<8x128xf32>
    %86 = arith.negf %85 : vector<8x128xf32>
    %87 = math.exp %86 : vector<8x128xf32>
    %cst_31 = arith.constant 1.000000e+00 : f32
    %88 = vector.broadcast %cst_31 : f32 to vector<8x128xf32>
    %89 = arith.addf %88, %87 : vector<8x128xf32>
    %90 = arith.divf %88, %89 : vector<8x128xf32>
    %91 = arith.mulf %82, %54 : vector<8x128xf32>
    %92 = arith.mulf %76, %84 : vector<8x128xf32>
    %93 = arith.addf %91, %92 : vector<8x128xf32>
    %94 = math.tanh %93 : vector<8x128xf32>
    %95 = arith.mulf %90, %94 : vector<8x128xf32>
    %96 = vector.broadcast %66 : i32 to vector<8x1xi32>
    %97 = arith.cmpi slt, %96, %3 : vector<8x1xi32>
    %98 = vector.shape_cast %97 : vector<8x1xi1> to vector<8x1xi1>
    %99 = vector.broadcast %98 : vector<8x1xi1> to vector<8x128xi1>
    %100 = arith.select %99, %95, %51 : vector<8x128xi1>, vector<8x128xf32>
    %101 = vector.shape_cast %97 : vector<8x1xi1> to vector<8x1xi1>
    %102 = vector.broadcast %101 : vector<8x1xi1> to vector<8x128xi1>
    %103 = arith.select %102, %93, %54 : vector<8x128xi1>, vector<8x128xf32>
    %cst_32 = arith.constant 0.000000e+00 : f32
    %104 = vector.shape_cast %97 : vector<8x1xi1> to vector<8x1xi1>
    %105 = vector.broadcast %104 : vector<8x1xi1> to vector<8x128xi1>
    %106 = vector.broadcast %cst_32 : f32 to vector<8x128xf32>
    %107 = arith.select %105, %95, %106 : vector<8x128xi1>, vector<8x128xf32>
    %c0_33 = arith.constant 0 : index
    %c1_34 = arith.constant 1 : index
    %c0_35 = arith.constant 0 : index
    %c0_36 = arith.constant 0 : index
    %108 = vector.load %arg5[%c0_33, %c1_34, %c0_35, %c0_36] : memref<1x8x8x128xf32, #tpu.memory_space<vmem>>, vector<1x1x8x128xf32>
    %109 = vector.shape_cast %108 : vector<1x1x8x128xf32> to vector<8x128xf32>
    %110 = vector.shape_cast %107 : vector<8x128xf32> to vector<1x1x8x128xf32>
    tpu.vector_store %arg5[%c0_33, %c1_34, %c0_35, %c0_36], %110 {strides = array<i32>} : memref<1x8x8x128xf32, #tpu.memory_space<vmem>>, vector<1x1x8x128xf32>,
    %c8_i32_37 = arith.constant 8 : i32
    %111 = arith.muli %arg1, %c8_i32_37 : i32
    %c2_i32 = arith.constant 2 : i32
    %112 = arith.addi %111, %c2_i32 : i32
    %c0_i32_38 = arith.constant 0 : i32
    %113 = arith.cmpi eq, %arg0, %c0_i32_38 : i32
    %c23_i32_39 = arith.constant 23 : i32
    %114 = arith.subi %c23_i32_39, %112 : i32
    %115 = arith.select %113, %112, %114 : i32
    %c0_40 = arith.constant 0 : index
    %c2 = arith.constant 2 : index
    %c0_41 = arith.constant 0 : index
    %c0_42 = arith.constant 0 : index
    %116 = vector.load %arg3[%c0_40, %c2, %c0_41, %c0_42] : memref<1x8x8x512xf32, #tpu.memory_space<vmem>>, vector<1x1x8x512xf32>
    %117 = vector.shape_cast %116 : vector<1x1x8x512xf32> to vector<8x512xf32>
    %cst_43 = arith.constant dense<0.000000e+00> : vector<8x512xf32>
    %118 = tpu.matmul %100, %5, %cst_43 {dimension_numbers = #tpu.dot_dimension_numbers<[1], [0], [0], [1], [0, 0, 1, 1], [], []>} : vector<8x128xf32>, vector<128x512xf32>, vector<8x512xf32> -> vector<8x512xf32>
    %119 = arith.addf %117, %118 : vector<8x512xf32>
    %120 = vector.extract_strided_slice %119 {offsets = [0, 0], sizes = [8, 128], strides = [1, 1]} : vector<8x512xf32> to vector<8x128xf32>
    %121 = arith.negf %120 : vector<8x128xf32>
    %122 = math.exp %121 : vector<8x128xf32>
    %cst_44 = arith.constant 1.000000e+00 : f32
    %123 = vector.broadcast %cst_44 : f32 to vector<8x128xf32>
    %124 = arith.addf %123, %122 : vector<8x128xf32>
    %125 = arith.divf %123, %124 : vector<8x128xf32>
    %126 = vector.extract_strided_slice %119 {offsets = [0, 128], sizes = [8, 128], strides = [1, 1]} : vector<8x512xf32> to vector<8x128xf32>
    %127 = arith.negf %126 : vector<8x128xf32>
    %128 = math.exp %127 : vector<8x128xf32>
    %cst_45 = arith.constant 1.000000e+00 : f32
    %129 = vector.broadcast %cst_45 : f32 to vector<8x128xf32>
    %130 = arith.addf %129, %128 : vector<8x128xf32>
    %131 = arith.divf %129, %130 : vector<8x128xf32>
    %132 = vector.extract_strided_slice %119 {offsets = [0, 256], sizes = [8, 128], strides = [1, 1]} : vector<8x512xf32> to vector<8x128xf32>
    %133 = math.tanh %132 : vector<8x128xf32>
    %134 = vector.extract_strided_slice %119 {offsets = [0, 384], sizes = [8, 128], strides = [1, 1]} : vector<8x512xf32> to vector<8x128xf32>
    %135 = arith.negf %134 : vector<8x128xf32>
    %136 = math.exp %135 : vector<8x128xf32>
    %cst_46 = arith.constant 1.000000e+00 : f32
    %137 = vector.broadcast %cst_46 : f32 to vector<8x128xf32>
    %138 = arith.addf %137, %136 : vector<8x128xf32>
    %139 = arith.divf %137, %138 : vector<8x128xf32>
    %140 = arith.mulf %131, %103 : vector<8x128xf32>
    %141 = arith.mulf %125, %133 : vector<8x128xf32>
    %142 = arith.addf %140, %141 : vector<8x128xf32>
    %143 = math.tanh %142 : vector<8x128xf32>
    %144 = arith.mulf %139, %143 : vector<8x128xf32>
    %145 = vector.broadcast %115 : i32 to vector<8x1xi32>
    %146 = arith.cmpi slt, %145, %3 : vector<8x1xi32>
    %147 = vector.shape_cast %146 : vector<8x1xi1> to vector<8x1xi1>
    %148 = vector.broadcast %147 : vector<8x1xi1> to vector<8x128xi1>
    %149 = arith.select %148, %144, %100 : vector<8x128xi1>, vector<8x128xf32>
    %150 = vector.shape_cast %146 : vector<8x1xi1> to vector<8x1xi1>
    %151 = vector.broadcast %150 : vector<8x1xi1> to vector<8x128xi1>
    %152 = arith.select %151, %142, %103 : vector<8x128xi1>, vector<8x128xf32>
    %cst_47 = arith.constant 0.000000e+00 : f32
    %153 = vector.shape_cast %146 : vector<8x1xi1> to vector<8x1xi1>
    %154 = vector.broadcast %153 : vector<8x1xi1> to vector<8x128xi1>
    %155 = vector.broadcast %cst_47 : f32 to vector<8x128xf32>
    %156 = arith.select %154, %144, %155 : vector<8x128xi1>, vector<8x128xf32>
    %c0_48 = arith.constant 0 : index
    %c2_49 = arith.constant 2 : index
    %c0_50 = arith.constant 0 : index
    %c0_51 = arith.constant 0 : index
    %157 = vector.load %arg5[%c0_48, %c2_49, %c0_50, %c0_51] : memref<1x8x8x128xf32, #tpu.memory_space<vmem>>, vector<1x1x8x128xf32>
    %158 = vector.shape_cast %157 : vector<1x1x8x128xf32> to vector<8x128xf32>
    %159 = vector.shape_cast %156 : vector<8x128xf32> to vector<1x1x8x128xf32>
    tpu.vector_store %arg5[%c0_48, %c2_49, %c0_50, %c0_51], %159 {strides = array<i32>} : memref<1x8x8x128xf32, #tpu.memory_space<vmem>>, vector<1x1x8x128xf32>,
    %c8_i32_52 = arith.constant 8 : i32
    %160 = arith.muli %arg1, %c8_i32_52 : i32
    %c3_i32 = arith.constant 3 : i32
    %161 = arith.addi %160, %c3_i32 : i32
    %c0_i32_53 = arith.constant 0 : i32
    %162 = arith.cmpi eq, %arg0, %c0_i32_53 : i32
    %c23_i32_54 = arith.constant 23 : i32
    %163 = arith.subi %c23_i32_54, %161 : i32
    %164 = arith.select %162, %161, %163 : i32
    %c0_55 = arith.constant 0 : index
    %c3 = arith.constant 3 : index
    %c0_56 = arith.constant 0 : index
    %c0_57 = arith.constant 0 : index
    %165 = vector.load %arg3[%c0_55, %c3, %c0_56, %c0_57] : memref<1x8x8x512xf32, #tpu.memory_space<vmem>>, vector<1x1x8x512xf32>
    %166 = vector.shape_cast %165 : vector<1x1x8x512xf32> to vector<8x512xf32>
    %cst_58 = arith.constant dense<0.000000e+00> : vector<8x512xf32>
    %167 = tpu.matmul %149, %5, %cst_58 {dimension_numbers = #tpu.dot_dimension_numbers<[1], [0], [0], [1], [0, 0, 1, 1], [], []>} : vector<8x128xf32>, vector<128x512xf32>, vector<8x512xf32> -> vector<8x512xf32>
    %168 = arith.addf %166, %167 : vector<8x512xf32>
    %169 = vector.extract_strided_slice %168 {offsets = [0, 0], sizes = [8, 128], strides = [1, 1]} : vector<8x512xf32> to vector<8x128xf32>
    %170 = arith.negf %169 : vector<8x128xf32>
    %171 = math.exp %170 : vector<8x128xf32>
    %cst_59 = arith.constant 1.000000e+00 : f32
    %172 = vector.broadcast %cst_59 : f32 to vector<8x128xf32>
    %173 = arith.addf %172, %171 : vector<8x128xf32>
    %174 = arith.divf %172, %173 : vector<8x128xf32>
    %175 = vector.extract_strided_slice %168 {offsets = [0, 128], sizes = [8, 128], strides = [1, 1]} : vector<8x512xf32> to vector<8x128xf32>
    %176 = arith.negf %175 : vector<8x128xf32>
    %177 = math.exp %176 : vector<8x128xf32>
    %cst_60 = arith.constant 1.000000e+00 : f32
    %178 = vector.broadcast %cst_60 : f32 to vector<8x128xf32>
    %179 = arith.addf %178, %177 : vector<8x128xf32>
    %180 = arith.divf %178, %179 : vector<8x128xf32>
    %181 = vector.extract_strided_slice %168 {offsets = [0, 256], sizes = [8, 128], strides = [1, 1]} : vector<8x512xf32> to vector<8x128xf32>
    %182 = math.tanh %181 : vector<8x128xf32>
    %183 = vector.extract_strided_slice %168 {offsets = [0, 384], sizes = [8, 128], strides = [1, 1]} : vector<8x512xf32> to vector<8x128xf32>
    %184 = arith.negf %183 : vector<8x128xf32>
    %185 = math.exp %184 : vector<8x128xf32>
    %cst_61 = arith.constant 1.000000e+00 : f32
    %186 = vector.broadcast %cst_61 : f32 to vector<8x128xf32>
    %187 = arith.addf %186, %185 : vector<8x128xf32>
    %188 = arith.divf %186, %187 : vector<8x128xf32>
    %189 = arith.mulf %180, %152 : vector<8x128xf32>
    %190 = arith.mulf %174, %182 : vector<8x128xf32>
    %191 = arith.addf %189, %190 : vector<8x128xf32>
    %192 = math.tanh %191 : vector<8x128xf32>
    %193 = arith.mulf %188, %192 : vector<8x128xf32>
    %194 = vector.broadcast %164 : i32 to vector<8x1xi32>
    %195 = arith.cmpi slt, %194, %3 : vector<8x1xi32>
    %196 = vector.shape_cast %195 : vector<8x1xi1> to vector<8x1xi1>
    %197 = vector.broadcast %196 : vector<8x1xi1> to vector<8x128xi1>
    %198 = arith.select %197, %193, %149 : vector<8x128xi1>, vector<8x128xf32>
    %199 = vector.shape_cast %195 : vector<8x1xi1> to vector<8x1xi1>
    %200 = vector.broadcast %199 : vector<8x1xi1> to vector<8x128xi1>
    %201 = arith.select %200, %191, %152 : vector<8x128xi1>, vector<8x128xf32>
    %cst_62 = arith.constant 0.000000e+00 : f32
    %202 = vector.shape_cast %195 : vector<8x1xi1> to vector<8x1xi1>
    %203 = vector.broadcast %202 : vector<8x1xi1> to vector<8x128xi1>
    %204 = vector.broadcast %cst_62 : f32 to vector<8x128xf32>
    %205 = arith.select %203, %193, %204 : vector<8x128xi1>, vector<8x128xf32>
    %c0_63 = arith.constant 0 : index
    %c3_64 = arith.constant 3 : index
    %c0_65 = arith.constant 0 : index
    %c0_66 = arith.constant 0 : index
    %206 = vector.load %arg5[%c0_63, %c3_64, %c0_65, %c0_66] : memref<1x8x8x128xf32, #tpu.memory_space<vmem>>, vector<1x1x8x128xf32>
    %207 = vector.shape_cast %206 : vector<1x1x8x128xf32> to vector<8x128xf32>
    %208 = vector.shape_cast %205 : vector<8x128xf32> to vector<1x1x8x128xf32>
    tpu.vector_store %arg5[%c0_63, %c3_64, %c0_65, %c0_66], %208 {strides = array<i32>} : memref<1x8x8x128xf32, #tpu.memory_space<vmem>>, vector<1x1x8x128xf32>,
    %c8_i32_67 = arith.constant 8 : i32
    %209 = arith.muli %arg1, %c8_i32_67 : i32
    %c4_i32 = arith.constant 4 : i32
    %210 = arith.addi %209, %c4_i32 : i32
    %c0_i32_68 = arith.constant 0 : i32
    %211 = arith.cmpi eq, %arg0, %c0_i32_68 : i32
    %c23_i32_69 = arith.constant 23 : i32
    %212 = arith.subi %c23_i32_69, %210 : i32
    %213 = arith.select %211, %210, %212 : i32
    %c0_70 = arith.constant 0 : index
    %c4 = arith.constant 4 : index
    %c0_71 = arith.constant 0 : index
    %c0_72 = arith.constant 0 : index
    %214 = vector.load %arg3[%c0_70, %c4, %c0_71, %c0_72] : memref<1x8x8x512xf32, #tpu.memory_space<vmem>>, vector<1x1x8x512xf32>
    %215 = vector.shape_cast %214 : vector<1x1x8x512xf32> to vector<8x512xf32>
    %cst_73 = arith.constant dense<0.000000e+00> : vector<8x512xf32>
    %216 = tpu.matmul %198, %5, %cst_73 {dimension_numbers = #tpu.dot_dimension_numbers<[1], [0], [0], [1], [0, 0, 1, 1], [], []>} : vector<8x128xf32>, vector<128x512xf32>, vector<8x512xf32> -> vector<8x512xf32>
    %217 = arith.addf %215, %216 : vector<8x512xf32>
    %218 = vector.extract_strided_slice %217 {offsets = [0, 0], sizes = [8, 128], strides = [1, 1]} : vector<8x512xf32> to vector<8x128xf32>
    %219 = arith.negf %218 : vector<8x128xf32>
    %220 = math.exp %219 : vector<8x128xf32>
    %cst_74 = arith.constant 1.000000e+00 : f32
    %221 = vector.broadcast %cst_74 : f32 to vector<8x128xf32>
    %222 = arith.addf %221, %220 : vector<8x128xf32>
    %223 = arith.divf %221, %222 : vector<8x128xf32>
    %224 = vector.extract_strided_slice %217 {offsets = [0, 128], sizes = [8, 128], strides = [1, 1]} : vector<8x512xf32> to vector<8x128xf32>
    %225 = arith.negf %224 : vector<8x128xf32>
    %226 = math.exp %225 : vector<8x128xf32>
    %cst_75 = arith.constant 1.000000e+00 : f32
    %227 = vector.broadcast %cst_75 : f32 to vector<8x128xf32>
    %228 = arith.addf %227, %226 : vector<8x128xf32>
    %229 = arith.divf %227, %228 : vector<8x128xf32>
    %230 = vector.extract_strided_slice %217 {offsets = [0, 256], sizes = [8, 128], strides = [1, 1]} : vector<8x512xf32> to vector<8x128xf32>
    %231 = math.tanh %230 : vector<8x128xf32>
    %232 = vector.extract_strided_slice %217 {offsets = [0, 384], sizes = [8, 128], strides = [1, 1]} : vector<8x512xf32> to vector<8x128xf32>
    %233 = arith.negf %232 : vector<8x128xf32>
    %234 = math.exp %233 : vector<8x128xf32>
    %cst_76 = arith.constant 1.000000e+00 : f32
    %235 = vector.broadcast %cst_76 : f32 to vector<8x128xf32>
    %236 = arith.addf %235, %234 : vector<8x128xf32>
    %237 = arith.divf %235, %236 : vector<8x128xf32>
    %238 = arith.mulf %229, %201 : vector<8x128xf32>
    %239 = arith.mulf %223, %231 : vector<8x128xf32>
    %240 = arith.addf %238, %239 : vector<8x128xf32>
    %241 = math.tanh %240 : vector<8x128xf32>
    %242 = arith.mulf %237, %241 : vector<8x128xf32>
    %243 = vector.broadcast %213 : i32 to vector<8x1xi32>
    %244 = arith.cmpi slt, %243, %3 : vector<8x1xi32>
    %245 = vector.shape_cast %244 : vector<8x1xi1> to vector<8x1xi1>
    %246 = vector.broadcast %245 : vector<8x1xi1> to vector<8x128xi1>
    %247 = arith.select %246, %242, %198 : vector<8x128xi1>, vector<8x128xf32>
    %248 = vector.shape_cast %244 : vector<8x1xi1> to vector<8x1xi1>
    %249 = vector.broadcast %248 : vector<8x1xi1> to vector<8x128xi1>
    %250 = arith.select %249, %240, %201 : vector<8x128xi1>, vector<8x128xf32>
    %cst_77 = arith.constant 0.000000e+00 : f32
    %251 = vector.shape_cast %244 : vector<8x1xi1> to vector<8x1xi1>
    %252 = vector.broadcast %251 : vector<8x1xi1> to vector<8x128xi1>
    %253 = vector.broadcast %cst_77 : f32 to vector<8x128xf32>
    %254 = arith.select %252, %242, %253 : vector<8x128xi1>, vector<8x128xf32>
    %c0_78 = arith.constant 0 : index
    %c4_79 = arith.constant 4 : index
    %c0_80 = arith.constant 0 : index
    %c0_81 = arith.constant 0 : index
    %255 = vector.load %arg5[%c0_78, %c4_79, %c0_80, %c0_81] : memref<1x8x8x128xf32, #tpu.memory_space<vmem>>, vector<1x1x8x128xf32>
    %256 = vector.shape_cast %255 : vector<1x1x8x128xf32> to vector<8x128xf32>
    %257 = vector.shape_cast %254 : vector<8x128xf32> to vector<1x1x8x128xf32>
    tpu.vector_store %arg5[%c0_78, %c4_79, %c0_80, %c0_81], %257 {strides = array<i32>} : memref<1x8x8x128xf32, #tpu.memory_space<vmem>>, vector<1x1x8x128xf32>,
    %c8_i32_82 = arith.constant 8 : i32
    %258 = arith.muli %arg1, %c8_i32_82 : i32
    %c5_i32 = arith.constant 5 : i32
    %259 = arith.addi %258, %c5_i32 : i32
    %c0_i32_83 = arith.constant 0 : i32
    %260 = arith.cmpi eq, %arg0, %c0_i32_83 : i32
    %c23_i32_84 = arith.constant 23 : i32
    %261 = arith.subi %c23_i32_84, %259 : i32
    %262 = arith.select %260, %259, %261 : i32
    %c0_85 = arith.constant 0 : index
    %c5 = arith.constant 5 : index
    %c0_86 = arith.constant 0 : index
    %c0_87 = arith.constant 0 : index
    %263 = vector.load %arg3[%c0_85, %c5, %c0_86, %c0_87] : memref<1x8x8x512xf32, #tpu.memory_space<vmem>>, vector<1x1x8x512xf32>
    %264 = vector.shape_cast %263 : vector<1x1x8x512xf32> to vector<8x512xf32>
    %cst_88 = arith.constant dense<0.000000e+00> : vector<8x512xf32>
    %265 = tpu.matmul %247, %5, %cst_88 {dimension_numbers = #tpu.dot_dimension_numbers<[1], [0], [0], [1], [0, 0, 1, 1], [], []>} : vector<8x128xf32>, vector<128x512xf32>, vector<8x512xf32> -> vector<8x512xf32>
    %266 = arith.addf %264, %265 : vector<8x512xf32>
    %267 = vector.extract_strided_slice %266 {offsets = [0, 0], sizes = [8, 128], strides = [1, 1]} : vector<8x512xf32> to vector<8x128xf32>
    %268 = arith.negf %267 : vector<8x128xf32>
    %269 = math.exp %268 : vector<8x128xf32>
    %cst_89 = arith.constant 1.000000e+00 : f32
    %270 = vector.broadcast %cst_89 : f32 to vector<8x128xf32>
    %271 = arith.addf %270, %269 : vector<8x128xf32>
    %272 = arith.divf %270, %271 : vector<8x128xf32>
    %273 = vector.extract_strided_slice %266 {offsets = [0, 128], sizes = [8, 128], strides = [1, 1]} : vector<8x512xf32> to vector<8x128xf32>
    %274 = arith.negf %273 : vector<8x128xf32>
    %275 = math.exp %274 : vector<8x128xf32>
    %cst_90 = arith.constant 1.000000e+00 : f32
    %276 = vector.broadcast %cst_90 : f32 to vector<8x128xf32>
    %277 = arith.addf %276, %275 : vector<8x128xf32>
    %278 = arith.divf %276, %277 : vector<8x128xf32>
    %279 = vector.extract_strided_slice %266 {offsets = [0, 256], sizes = [8, 128], strides = [1, 1]} : vector<8x512xf32> to vector<8x128xf32>
    %280 = math.tanh %279 : vector<8x128xf32>
    %281 = vector.extract_strided_slice %266 {offsets = [0, 384], sizes = [8, 128], strides = [1, 1]} : vector<8x512xf32> to vector<8x128xf32>
    %282 = arith.negf %281 : vector<8x128xf32>
    %283 = math.exp %282 : vector<8x128xf32>
    %cst_91 = arith.constant 1.000000e+00 : f32
    %284 = vector.broadcast %cst_91 : f32 to vector<8x128xf32>
    %285 = arith.addf %284, %283 : vector<8x128xf32>
    %286 = arith.divf %284, %285 : vector<8x128xf32>
    %287 = arith.mulf %278, %250 : vector<8x128xf32>
    %288 = arith.mulf %272, %280 : vector<8x128xf32>
    %289 = arith.addf %287, %288 : vector<8x128xf32>
    %290 = math.tanh %289 : vector<8x128xf32>
    %291 = arith.mulf %286, %290 : vector<8x128xf32>
    %292 = vector.broadcast %262 : i32 to vector<8x1xi32>
    %293 = arith.cmpi slt, %292, %3 : vector<8x1xi32>
    %294 = vector.shape_cast %293 : vector<8x1xi1> to vector<8x1xi1>
    %295 = vector.broadcast %294 : vector<8x1xi1> to vector<8x128xi1>
    %296 = arith.select %295, %291, %247 : vector<8x128xi1>, vector<8x128xf32>
    %297 = vector.shape_cast %293 : vector<8x1xi1> to vector<8x1xi1>
    %298 = vector.broadcast %297 : vector<8x1xi1> to vector<8x128xi1>
    %299 = arith.select %298, %289, %250 : vector<8x128xi1>, vector<8x128xf32>
    %cst_92 = arith.constant 0.000000e+00 : f32
    %300 = vector.shape_cast %293 : vector<8x1xi1> to vector<8x1xi1>
    %301 = vector.broadcast %300 : vector<8x1xi1> to vector<8x128xi1>
    %302 = vector.broadcast %cst_92 : f32 to vector<8x128xf32>
    %303 = arith.select %301, %291, %302 : vector<8x128xi1>, vector<8x128xf32>
    %c0_93 = arith.constant 0 : index
    %c5_94 = arith.constant 5 : index
    %c0_95 = arith.constant 0 : index
    %c0_96 = arith.constant 0 : index
    %304 = vector.load %arg5[%c0_93, %c5_94, %c0_95, %c0_96] : memref<1x8x8x128xf32, #tpu.memory_space<vmem>>, vector<1x1x8x128xf32>
    %305 = vector.shape_cast %304 : vector<1x1x8x128xf32> to vector<8x128xf32>
    %306 = vector.shape_cast %303 : vector<8x128xf32> to vector<1x1x8x128xf32>
    tpu.vector_store %arg5[%c0_93, %c5_94, %c0_95, %c0_96], %306 {strides = array<i32>} : memref<1x8x8x128xf32, #tpu.memory_space<vmem>>, vector<1x1x8x128xf32>,
    %c8_i32_97 = arith.constant 8 : i32
    %307 = arith.muli %arg1, %c8_i32_97 : i32
    %c6_i32 = arith.constant 6 : i32
    %308 = arith.addi %307, %c6_i32 : i32
    %c0_i32_98 = arith.constant 0 : i32
    %309 = arith.cmpi eq, %arg0, %c0_i32_98 : i32
    %c23_i32_99 = arith.constant 23 : i32
    %310 = arith.subi %c23_i32_99, %308 : i32
    %311 = arith.select %309, %308, %310 : i32
    %c0_100 = arith.constant 0 : index
    %c6 = arith.constant 6 : index
    %c0_101 = arith.constant 0 : index
    %c0_102 = arith.constant 0 : index
    %312 = vector.load %arg3[%c0_100, %c6, %c0_101, %c0_102] : memref<1x8x8x512xf32, #tpu.memory_space<vmem>>, vector<1x1x8x512xf32>
    %313 = vector.shape_cast %312 : vector<1x1x8x512xf32> to vector<8x512xf32>
    %cst_103 = arith.constant dense<0.000000e+00> : vector<8x512xf32>
    %314 = tpu.matmul %296, %5, %cst_103 {dimension_numbers = #tpu.dot_dimension_numbers<[1], [0], [0], [1], [0, 0, 1, 1], [], []>} : vector<8x128xf32>, vector<128x512xf32>, vector<8x512xf32> -> vector<8x512xf32>
    %315 = arith.addf %313, %314 : vector<8x512xf32>
    %316 = vector.extract_strided_slice %315 {offsets = [0, 0], sizes = [8, 128], strides = [1, 1]} : vector<8x512xf32> to vector<8x128xf32>
    %317 = arith.negf %316 : vector<8x128xf32>
    %318 = math.exp %317 : vector<8x128xf32>
    %cst_104 = arith.constant 1.000000e+00 : f32
    %319 = vector.broadcast %cst_104 : f32 to vector<8x128xf32>
    %320 = arith.addf %319, %318 : vector<8x128xf32>
    %321 = arith.divf %319, %320 : vector<8x128xf32>
    %322 = vector.extract_strided_slice %315 {offsets = [0, 128], sizes = [8, 128], strides = [1, 1]} : vector<8x512xf32> to vector<8x128xf32>
    %323 = arith.negf %322 : vector<8x128xf32>
    %324 = math.exp %323 : vector<8x128xf32>
    %cst_105 = arith.constant 1.000000e+00 : f32
    %325 = vector.broadcast %cst_105 : f32 to vector<8x128xf32>
    %326 = arith.addf %325, %324 : vector<8x128xf32>
    %327 = arith.divf %325, %326 : vector<8x128xf32>
    %328 = vector.extract_strided_slice %315 {offsets = [0, 256], sizes = [8, 128], strides = [1, 1]} : vector<8x512xf32> to vector<8x128xf32>
    %329 = math.tanh %328 : vector<8x128xf32>
    %330 = vector.extract_strided_slice %315 {offsets = [0, 384], sizes = [8, 128], strides = [1, 1]} : vector<8x512xf32> to vector<8x128xf32>
    %331 = arith.negf %330 : vector<8x128xf32>
    %332 = math.exp %331 : vector<8x128xf32>
    %cst_106 = arith.constant 1.000000e+00 : f32
    %333 = vector.broadcast %cst_106 : f32 to vector<8x128xf32>
    %334 = arith.addf %333, %332 : vector<8x128xf32>
    %335 = arith.divf %333, %334 : vector<8x128xf32>
    %336 = arith.mulf %327, %299 : vector<8x128xf32>
    %337 = arith.mulf %321, %329 : vector<8x128xf32>
    %338 = arith.addf %336, %337 : vector<8x128xf32>
    %339 = math.tanh %338 : vector<8x128xf32>
    %340 = arith.mulf %335, %339 : vector<8x128xf32>
    %341 = vector.broadcast %311 : i32 to vector<8x1xi32>
    %342 = arith.cmpi slt, %341, %3 : vector<8x1xi32>
    %343 = vector.shape_cast %342 : vector<8x1xi1> to vector<8x1xi1>
    %344 = vector.broadcast %343 : vector<8x1xi1> to vector<8x128xi1>
    %345 = arith.select %344, %340, %296 : vector<8x128xi1>, vector<8x128xf32>
    %346 = vector.shape_cast %342 : vector<8x1xi1> to vector<8x1xi1>
    %347 = vector.broadcast %346 : vector<8x1xi1> to vector<8x128xi1>
    %348 = arith.select %347, %338, %299 : vector<8x128xi1>, vector<8x128xf32>
    %cst_107 = arith.constant 0.000000e+00 : f32
    %349 = vector.shape_cast %342 : vector<8x1xi1> to vector<8x1xi1>
    %350 = vector.broadcast %349 : vector<8x1xi1> to vector<8x128xi1>
    %351 = vector.broadcast %cst_107 : f32 to vector<8x128xf32>
    %352 = arith.select %350, %340, %351 : vector<8x128xi1>, vector<8x128xf32>
    %c0_108 = arith.constant 0 : index
    %c6_109 = arith.constant 6 : index
    %c0_110 = arith.constant 0 : index
    %c0_111 = arith.constant 0 : index
    %353 = vector.load %arg5[%c0_108, %c6_109, %c0_110, %c0_111] : memref<1x8x8x128xf32, #tpu.memory_space<vmem>>, vector<1x1x8x128xf32>
    %354 = vector.shape_cast %353 : vector<1x1x8x128xf32> to vector<8x128xf32>
    %355 = vector.shape_cast %352 : vector<8x128xf32> to vector<1x1x8x128xf32>
    tpu.vector_store %arg5[%c0_108, %c6_109, %c0_110, %c0_111], %355 {strides = array<i32>} : memref<1x8x8x128xf32, #tpu.memory_space<vmem>>, vector<1x1x8x128xf32>,
    %c8_i32_112 = arith.constant 8 : i32
    %356 = arith.muli %arg1, %c8_i32_112 : i32
    %c7_i32 = arith.constant 7 : i32
    %357 = arith.addi %356, %c7_i32 : i32
    %c0_i32_113 = arith.constant 0 : i32
    %358 = arith.cmpi eq, %arg0, %c0_i32_113 : i32
    %c23_i32_114 = arith.constant 23 : i32
    %359 = arith.subi %c23_i32_114, %357 : i32
    %360 = arith.select %358, %357, %359 : i32
    %c0_115 = arith.constant 0 : index
    %c7 = arith.constant 7 : index
    %c0_116 = arith.constant 0 : index
    %c0_117 = arith.constant 0 : index
    %361 = vector.load %arg3[%c0_115, %c7, %c0_116, %c0_117] : memref<1x8x8x512xf32, #tpu.memory_space<vmem>>, vector<1x1x8x512xf32>
    %362 = vector.shape_cast %361 : vector<1x1x8x512xf32> to vector<8x512xf32>
    %cst_118 = arith.constant dense<0.000000e+00> : vector<8x512xf32>
    %363 = tpu.matmul %345, %5, %cst_118 {dimension_numbers = #tpu.dot_dimension_numbers<[1], [0], [0], [1], [0, 0, 1, 1], [], []>} : vector<8x128xf32>, vector<128x512xf32>, vector<8x512xf32> -> vector<8x512xf32>
    %364 = arith.addf %362, %363 : vector<8x512xf32>
    %365 = vector.extract_strided_slice %364 {offsets = [0, 0], sizes = [8, 128], strides = [1, 1]} : vector<8x512xf32> to vector<8x128xf32>
    %366 = arith.negf %365 : vector<8x128xf32>
    %367 = math.exp %366 : vector<8x128xf32>
    %cst_119 = arith.constant 1.000000e+00 : f32
    %368 = vector.broadcast %cst_119 : f32 to vector<8x128xf32>
    %369 = arith.addf %368, %367 : vector<8x128xf32>
    %370 = arith.divf %368, %369 : vector<8x128xf32>
    %371 = vector.extract_strided_slice %364 {offsets = [0, 128], sizes = [8, 128], strides = [1, 1]} : vector<8x512xf32> to vector<8x128xf32>
    %372 = arith.negf %371 : vector<8x128xf32>
    %373 = math.exp %372 : vector<8x128xf32>
    %cst_120 = arith.constant 1.000000e+00 : f32
    %374 = vector.broadcast %cst_120 : f32 to vector<8x128xf32>
    %375 = arith.addf %374, %373 : vector<8x128xf32>
    %376 = arith.divf %374, %375 : vector<8x128xf32>
    %377 = vector.extract_strided_slice %364 {offsets = [0, 256], sizes = [8, 128], strides = [1, 1]} : vector<8x512xf32> to vector<8x128xf32>
    %378 = math.tanh %377 : vector<8x128xf32>
    %379 = vector.extract_strided_slice %364 {offsets = [0, 384], sizes = [8, 128], strides = [1, 1]} : vector<8x512xf32> to vector<8x128xf32>
    %380 = arith.negf %379 : vector<8x128xf32>
    %381 = math.exp %380 : vector<8x128xf32>
    %cst_121 = arith.constant 1.000000e+00 : f32
    %382 = vector.broadcast %cst_121 : f32 to vector<8x128xf32>
    %383 = arith.addf %382, %381 : vector<8x128xf32>
    %384 = arith.divf %382, %383 : vector<8x128xf32>
    %385 = arith.mulf %376, %348 : vector<8x128xf32>
    %386 = arith.mulf %370, %378 : vector<8x128xf32>
    %387 = arith.addf %385, %386 : vector<8x128xf32>
    %388 = math.tanh %387 : vector<8x128xf32>
    %389 = arith.mulf %384, %388 : vector<8x128xf32>
    %390 = vector.broadcast %360 : i32 to vector<8x1xi32>
    %391 = arith.cmpi slt, %390, %3 : vector<8x1xi32>
    %392 = vector.shape_cast %391 : vector<8x1xi1> to vector<8x1xi1>
    %393 = vector.broadcast %392 : vector<8x1xi1> to vector<8x128xi1>
    %394 = arith.select %393, %389, %345 : vector<8x128xi1>, vector<8x128xf32>
    %395 = vector.shape_cast %391 : vector<8x1xi1> to vector<8x1xi1>
    %396 = vector.broadcast %395 : vector<8x1xi1> to vector<8x128xi1>
    %397 = arith.select %396, %387, %348 : vector<8x128xi1>, vector<8x128xf32>
    %cst_122 = arith.constant 0.000000e+00 : f32
    %398 = vector.shape_cast %391 : vector<8x1xi1> to vector<8x1xi1>
    %399 = vector.broadcast %398 : vector<8x1xi1> to vector<8x128xi1>
    %400 = vector.broadcast %cst_122 : f32 to vector<8x128xf32>
    %401 = arith.select %399, %389, %400 : vector<8x128xi1>, vector<8x128xf32>
    %c0_123 = arith.constant 0 : index
    %c7_124 = arith.constant 7 : index
    %c0_125 = arith.constant 0 : index
    %c0_126 = arith.constant 0 : index
    %402 = vector.load %arg5[%c0_123, %c7_124, %c0_125, %c0_126] : memref<1x8x8x128xf32, #tpu.memory_space<vmem>>, vector<1x1x8x128xf32>
    %403 = vector.shape_cast %402 : vector<1x1x8x128xf32> to vector<8x128xf32>
    %404 = vector.shape_cast %401 : vector<8x128xf32> to vector<1x1x8x128xf32>
    tpu.vector_store %arg5[%c0_123, %c7_124, %c0_125, %c0_126], %404 {strides = array<i32>} : memref<1x8x8x128xf32, #tpu.memory_space<vmem>>, vector<1x1x8x128xf32>,
    %405 = vector.shape_cast %394 : vector<8x128xf32> to vector<1x8x128xf32>
    %406 = vector.shape_cast %397 : vector<8x128xf32> to vector<1x8x128xf32>
    %407 = tpu.concatenate %405, %406 in 0 : vector<1x8x128xf32>, vector<1x8x128xf32> -> vector<2x8x128xf32>
    %408 = arith.index_cast %arg0 : i32 to index
    %c0_127 = arith.constant 0 : index
    %c0_128 = arith.constant 0 : index
    %c0_129 = arith.constant 0 : index
    %409 = vector.load %arg6[%408, %c0_127, %c0_128, %c0_129] : memref<2x2x8x128xf32, #tpu.memory_space<vmem>>, vector<1x2x8x128xf32>
    %410 = vector.shape_cast %409 : vector<1x2x8x128xf32> to vector<2x8x128xf32>
    %411 = vector.shape_cast %407 : vector<2x8x128xf32> to vector<1x2x8x128xf32>
    tpu.vector_store %arg6[%408, %c0_127, %c0_128, %c0_129], %411 {strides = array<i32>} : memref<2x2x8x128xf32, #tpu.memory_space<vmem>>, vector<1x2x8x128xf32>,
    return
  }
  func.func @transform_0(%arg0: i32, %arg1: i32) -> (i32, i32) {
    %c0_i32 = arith.constant 0 : i32
    %c0_i32_0 = arith.constant 0 : i32
    %c0_i32_1 = arith.constant 0 : i32
    return %c0_i32, %c0_i32_0 : i32, i32
  }
  func.func @transform_1(%arg0: i32, %arg1: i32) -> (i32, i32, i32, i32) {
    %c0_i32 = arith.constant 0 : i32
    %c0_i32_0 = arith.constant 0 : i32
    %c0_i32_1 = arith.constant 0 : i32
    return %arg0, %arg1, %c0_i32, %c0_i32_0 : i32, i32, i32, i32
  }
  func.func @transform_2(%arg0: i32, %arg1: i32) -> (i32, i32, i32) {
    %c0_i32 = arith.constant 0 : i32
    %c0_i32_0 = arith.constant 0 : i32
    %c0_i32_1 = arith.constant 0 : i32
    return %arg0, %c0_i32, %c0_i32_0 : i32, i32, i32
  }
  func.func @transform_3(%arg0: i32, %arg1: i32) -> (i32, i32, i32, i32) {
    %c0_i32 = arith.constant 0 : i32
    %c0_i32_0 = arith.constant 0 : i32
    %c0_i32_1 = arith.constant 0 : i32
    return %arg0, %arg1, %c0_i32, %c0_i32_0 : i32, i32, i32, i32
  }
}

</mosaic_0001>

<bundles_post_ra>
// kernel: reverse
= control target key start
LH: loop header
LB: loop body
LE: loop exit
PB: predicated region body
PF: predicated region fallthrough
CT: control target
= control target key end

     0   :  { %s248_s0 = inlined_call_operand.vmem [shape: f32[20,8,128], index: 0, kind: input, shape index: {}]   ;;  %s249_s1 = inlined_call_operand.vmem [shape: f32[20,8,128], index: 1, kind: output, shape index: {}]  }
   0x1   :  { %v80_v0 = vld [vmem:[%s248_s0 + $0x98] sm:$0xff]  ;;  %v81_v1 = vld [vmem:[%s248_s0 + $0x90] sm:$0xff]  ;;  %v83_v2 = vld [vmem:[%s248_s0 + $0x88] sm:$0xff] }
   0x2   :  { %4 = vst [vmem:[%s249_s1] sm:$0xff] %v80_v0  ;;  %82 = vst [vmem:[%s249_s1 + $0x8] sm:$0xff] %v81_v1  ;;  %v85_v3 = vld [vmem:[%s248_s0 + $0x80] sm:$0xff]  ;;  %v87_v4 = vld [vmem:[%s248_s0 + $0x78] sm:$0xff] }
   0x3   :  { %84 = vst [vmem:[%s249_s1 + $0x10] sm:$0xff] %v83_v2  ;;  %v89_v5 = vld [vmem:[%s248_s0 + $0x70] sm:$0xff]  ;;  %86 = vst [vmem:[%s249_s1 + $0x18] sm:$0xff] %v85_v3  ;;  %v91_v6 = vld [vmem:[%s248_s0 + $0x68] sm:$0xff] }
   0x4   :  { %88 = vst [vmem:[%s249_s1 + $0x20] sm:$0xff] %v87_v4  ;;  %90 = vst [vmem:[%s249_s1 + $0x28] sm:$0xff] %v89_v5  ;;  %v93_v7 = vld [vmem:[%s248_s0 + $0x60] sm:$0xff]  ;;  %v95_v8 = vld [vmem:[%s248_s0 + $0x58] sm:$0xff] }
   0x5   :  { %92 = vst [vmem:[%s249_s1 + $0x30] sm:$0xff] %v91_v6  ;;  %94 = vst [vmem:[%s249_s1 + $0x38] sm:$0xff] %v93_v7  ;;  %v97_v9 = vld [vmem:[%s248_s0 + $0x50] sm:$0xff]  ;;  %v99_v10 = vld [vmem:[%s248_s0 + $0x48] sm:$0xff] }
   0x6   :  { %96 = vst [vmem:[%s249_s1 + $0x40] sm:$0xff] %v95_v8  ;;  %v101_v11 = vld [vmem:[%s248_s0 + $0x40] sm:$0xff]  ;;  %98 = vst [vmem:[%s249_s1 + $0x48] sm:$0xff] %v97_v9  ;;  %v103_v12 = vld [vmem:[%s248_s0 + $0x38] sm:$0xff] }
   0x7   :  { %100 = vst [vmem:[%s249_s1 + $0x50] sm:$0xff] %v99_v10  ;;  %102 = vst [vmem:[%s249_s1 + $0x58] sm:$0xff] %v101_v11  ;;  %v105_v13 = vld [vmem:[%s248_s0 + $0x30] sm:$0xff]  ;;  %v107_v14 = vld [vmem:[%s248_s0 + $0x28] sm:$0xff] }
   0x8   :  { %104 = vst [vmem:[%s249_s1 + $0x60] sm:$0xff] %v103_v12  ;;  %106 = vst [vmem:[%s249_s1 + $0x68] sm:$0xff] %v105_v13  ;;  %v109_v15 = vld [vmem:[%s248_s0 + $0x20] sm:$0xff]  ;;  %v111_v16 = vld [vmem:[%s248_s0 + $0x18] sm:$0xff] }
   0x9   :  { %108 = vst [vmem:[%s249_s1 + $0x70] sm:$0xff] %v107_v14  ;;  %v113_v17 = vld [vmem:[%s248_s0 + $0x10] sm:$0xff]  ;;  %110 = vst [vmem:[%s249_s1 + $0x78] sm:$0xff] %v109_v15  ;;  %v115_v18 = vld [vmem:[%s248_s0 + $0x8] sm:$0xff] }
   0xa   :  { %112 = vst [vmem:[%s249_s1 + $0x80] sm:$0xff] %v111_v16  ;;  %114 = vst [vmem:[%s249_s1 + $0x88] sm:$0xff] %v113_v17  ;;  %v77_v19 = vld [vmem:[%s248_s0] sm:$0xff] }
   0xb   :  { %116 = vst [vmem:[%s249_s1 + $0x90] sm:$0xff] %v115_v18  ;;  %117 = vst [vmem:[%s249_s1 + $0x98] sm:$0xff] %v77_v19 }

// kernel: seq2seq_encoder.1
= control target key start
LH: loop header
LB: loop body
LE: loop exit
PB: predicated region body
PF: predicated region fallthrough
CT: control target
= control target key end

     0   :  { %s2768_s12 = smov 0   ;;  %s2770_s13 = smov 0   ;;  %s3415_s0 = inlined_call_operand.vmem [shape: s32[8,1], index: 0, kind: input, shape index: {}]   ;;  %s3416_s1 = inlined_call_operand.vmem [shape: f32[2,24,8,512], index: 1, kind: input, shape index: {}]   ;;  %s3417_s2 = inlined_call_operand.vmem [shape: f32[2,128,512], index: 2, kind: input, shape index: {}]   ;;  %s3418_s3 = inlined_call_operand.vmem [shape: f32[2,24,8,128], index: 3, kind: output, shape index: {}]  }
   0x1   :  { %s2772_s14 = smov 0   ;;  %s2774_s15 = smov 0  }
   0x2   :  { %s2776_s16 = smov 0  }
   0x3 LB: > { %s22_s17 = sadd.s32 1, %s2735_s14  ;;  %s25_s18 = sadd.s32 1, %s2739_s15  ;;  %s2743_s16 = sphi %s2776_s16, %s13_s16   ;;  %s2739_s15 = sphi %s2774_s15, %s3422_s15   ;;  %s2735_s14 = sphi %s2772_s14, %s3421_s14   ;;  %s2731_s13 = sphi %s2770_s13, %s3420_s13   ;;  %s2727_s12 = sphi %s2768_s12, %s3419_s12  }
   0x4   : > { %p23_p0 = scmp.ge.s32.totalorder %s22_s17, 3  ;;  %p1944_p1 = scmp.ge.s32.totalorder %s2743_s16, 1 }
   0x5   : > { %p169_p2 = scmp.lt.s32.totalorder %s2743_s16, 7 }
   0x6   : > { %s3424_s17 = smov (%p23_p0, %s22_s17), 0  ;;  %s3426_s18 = smov (!%p23_p0, %s25_s18), %s2739_s15 }
   0x7   : > { %p170_p3 = pnand %p1944_p1, %p169_p2  ;;  %p27_p4 = scmp.ge.s32.totalorder %s3426_s18, 2 }
   0x8   : > { %s2803_s19 = sshll.u32 (!%p170_p3), %s2727_s12, 3  ;;  %p208_p5 = scmp.lt.s32.totalorder (!%p170_p3), %s2731_s13, 1 }
   0x9   : > { %s3428_s18 = smov (%p27_p4, %s3426_s18), 0  ;;  %173 = sbr.rel (%p170_p3) target bundleno = 2137 (0x859), region = 32 }
   0xa   : > { %p210_p6 = scmp.lt.s32.totalorder (!%p170_p3), %s2803_s19, 23  ;;  %p1952_p7 = scmp.ne.s32.totalorder (!%p170_p3), %s2727_s12, 0 }
  0x10   : > { %s209_s20 = scalar_select %p208_p5, %s2731_s13, 1 }
  0x11   : > { %s211_s21 = scalar_select %p210_p6, %s2803_s19, 23 }
  0x12   : > { %s2530_s22 = smul.u32 96, %s209_s20  ;;  %s2017_s23 = sshll.u32 %s209_s20, 9  ;;  %v2745_v0 = vmov (!%p1952_p7), 0.0  }
  0x13   : > { %s1946_s24 = sshll.u32 %s211_s21, 2  ;;  %s2812_s27 = scalar_lea.vmem %s3417_s2, %s2017_s23 }
  0x14   : > { %s214_s28 = sadd.s32 %s2530_s22, %s1946_s24  ;;  %s2531_s29 = smul.u32 24, %s209_s20 }
  0x15   : > { %s1947_s30 = sshll.u32 %s214_s28, 3  ;;  %236 = sbr.rel (%p1952_p7) target bundleno = 28 (0x1c), region = 36 }
  0x16   : > { %s2817_s6 = scalar_lea.vmem %s3416_s1, %s1947_s30  ;;  %s229_s7 = sadd.s32 %s2531_s29, %s211_s21 }
  0x17   : > { %s1951_s8 = sshll.u32 %s229_s7, 3  ;;  %s1953_s23 = sshll.u32 (!%p1952_p7), %s2731_s13, 4 }
  0x18   : > { %s2822_s11 = scalar_lea.vmem %s3418_s3, %s1951_s8  ;;  %s238_s22 = scalar_lea.vmem (!%p1952_p7), [#allocation2], %s1953_s23 }
  0x19   : > { %239 = vst [vmem:[%s238_s22] sm:$0xff] (!%p1952_p7), %v2745_v0  ;;  %240 = vst [vmem:[%s238_s22 + $0x8] sm:$0xff] (!%p1952_p7), %v2745_v0 }
  0x1c PF: > { %v243_v1 = vld [vmem:[%s2812_s27 + $0x8] sm:$0xff]  ;;  %v242_v3 = vld [vmem:[%s2812_s27] sm:$0xff]  ;;  %v2746_v8 = vmov 0.0   ;;  %v2747_v14 = vmov 0   ;;  %v245_v21 = vld [vmem:[%s2812_s27 + $0x18] sm:$0xff]  ;;  %p311_p8 = scmp.eq.s32.totalorder %s2731_s13, 0 }
  0x1d   : > { %v247_v2 = vld [vmem:[%s2812_s27 + $0x28] sm:$0xff]  ;;  %v246_v5 = vld [vmem:[%s2812_s27 + $0x20] sm:$0xff]  ;;  %382 = vmatprep.mubr.f32.mxu0 %v2746_v8  ;;  %453 = vmatprep.mubr.f32.mxu1 %v2746_v8  ;;  %v249_v22 = vld [vmem:[%s2812_s27 + $0x38] sm:$0xff]  ;;  %s312_s12 = ssub.s32 23, %s2803_s19  ;;  %s499_s20 = sadd.s32 1, %s2803_s19 }
  0x1e   : > { %v2829_v4 = vpack.c.bf16 %v247_v2, %v243_v1  ;;  %v251_v6 = vld [vmem:[%s2812_s27 + $0x48] sm:$0xff]  ;;  %v2836_v9 = vpack.c.bf16 %v246_v5, %v242_v3  ;;  %v250_v11 = vld [vmem:[%s2812_s27 + $0x40] sm:$0xff]  ;;  %2575 = vset.pattern.permute.xlu0 %v2747_v14  ;;  %2576 = vset.pattern.permute.xlu1 %v2747_v14  ;;  %v2859_v24 = vpack.c.bf16 %v249_v22, %v245_v21  ;;  %v244_v25 = vld [vmem:[%s2812_s27 + $0x10] sm:$0xff]  ;;  %s500_s21 = ssub.s32 22, %s2803_s19  ;;  %s1069_s25 = sadd.s32 4, %s2803_s19 }
  0x1f   : > { %v255_v7 = vld [vmem:[%s2812_s27 + $0x68] sm:$0xff]  ;;  %v254_v12 = vld [vmem:[%s2812_s27 + $0x60] sm:$0xff]  ;;  %v248_v26 = vld [vmem:[%s2812_s27 + $0x30] sm:$0xff]  ;;  %s2919_s24 = scalar_select %p311_p8, %s2803_s19, %s312_s12 }
  0x20   : > { %v2838_v10 = vpack.c.bf16 %v255_v7, %v251_v6  ;;  %v259_v13 = vld [vmem:[%s2812_s27 + $0x88] sm:$0xff]  ;;  %2019 = vmatprep.subr.bf16.mxu0 %v2829_v4  ;;  %v2848_v16 = vpack.c.bf16 %v254_v12, %v250_v11  ;;  %v258_v17 = vld [vmem:[%s2812_s27 + $0x80] sm:$0xff]  ;;  %v2863_v27 = vpack.c.bf16 %v248_v26, %v244_v25  ;;  %2051 = vmatprep.subr.bf16.mxu1 %v2859_v24  ;;  %v253_v29 = vld [vmem:[%s2812_s27 + $0x58] sm:$0xff]  ;;  %s3430_s20 = smov (!%p311_p8, %s499_s20), %s500_s21  ;;  %s1070_s26 = ssub.s32 19, %s2803_s19 }
  0x21   : > { %v263_v15 = vld [vmem:[%s2812_s27 + $0xa8] sm:$0xff]  ;;  %2021 = vmatpush1.bf16.msra.mxu0 %v2836_v9  ;;  %v262_v18 = vld [vmem:[%s2812_s27 + $0xa0] sm:$0xff]  ;;  %v257_v30 = vld [vmem:[%s2812_s27 + $0x78] sm:$0xff]  ;;  %v488_v11 = vstv %s2919_s24  ;;  %s3432_s25 = smov (!%p311_p8, %s1069_s25), %s1070_s26  ;;  %s1449_s28 = sadd.s32 6, %s2803_s19 }
  0x22   : > { %2023 = vmatprep.subr.bf16.mxu0 %v2838_v10  ;;  %v2853_v19 = vpack.c.bf16 %v263_v15, %v259_v13  ;;  %v267_v20 = vld [vmem:[%s2812_s27 + $0xc8] sm:$0xff]  ;;  %v2866_v28 = vpack.c.bf16 %v262_v18, %v258_v17  ;;  %v252_v31 = vld [vmem:[%s2812_s27 + $0x50] sm:$0xff]  ;;  %v266_v33 = vld [vmem:[%s2812_s27 + $0xc0] sm:$0xff]  ;;  %2053 = vmatpush1.bf16.msra.mxu1 %v2863_v27  ;;  %v2878_v35 = vpack.c.bf16 %v257_v30, %v253_v29  ;;  %v677_v12 = vstv %s3430_s20  ;;  %s1450_s29 = ssub.s32 17, %s2803_s19  ;;  %s1954_s5 = sshll.u32 %s2731_s13, 4 }
  0x23   : > { %v271_v23 = vld [vmem:[%s2812_s27 + $0xe8] sm:$0xff]  ;;  %v270_v34 = vld [vmem:[%s2812_s27 + $0xe0] sm:$0xff]  ;;  %v256_v36 = vld [vmem:[%s2812_s27 + $0x70] sm:$0xff]  ;;  %s3434_s28 = smov (!%p311_p8, %s1449_s28), %s1450_s29  ;;  %s3027_s7 = scalar_lea.vmem [#allocation2], %s1954_s5 }
  0x24   : > { %v2873_v32 = vpack.c.bf16 %v271_v23, %v267_v20  ;;  %v275_v37 = vld [vmem:[%s2812_s27 + $0x108] sm:$0xff]  ;;  %v2883_v39 = vpack.c.bf16 %v256_v36, %v252_v31  ;;  %v261_v40 = vld [vmem:[%s2812_s27 + $0x98] sm:$0xff]  ;;  %2055 = vmatprep.subr.bf16.mxu1 %v2878_v35  ;;  %v260_v42 = vld [vmem:[%s2812_s27 + $0x90] sm:$0xff]  ;;  %v2893_v44 = vpack.c.bf16 %v270_v34, %v266_v33  ;;  %v1247_v34 = vstv %s3432_s25  ;;  %s690_s8 = ssub.s32 21, %s2803_s19  ;;  %s879_s9 = sadd.s32 3, %s2803_s19 }
  0x25   : > { %2025 = vmatpush1.bf16.msra.mxu0 %v2848_v16  ;;  %v279_v38 = vld [vmem:[%s2812_s27 + $0x128] sm:$0xff]  ;;  %v265_v41 = vld [vmem:[%s2812_s27 + $0xb8] sm:$0xff]  ;;  %v264_v43 = vld [vmem:[%s2812_s27 + $0xb0] sm:$0xff]  ;;  %s880_s10 = ssub.s32 20, %s2803_s19  ;;  %s1259_s23 = sadd.s32 5, %s2803_s19 }
  0x26   : > { %2027 = vmatprep.subr.bf16.mxu0 %v2853_v19  ;;  %v274_v45 = vld [vmem:[%s2812_s27 + $0x100] sm:$0xff]  ;;  %v2897_v47 = vpack.c.bf16 %v265_v41, %v261_v40  ;;  %v2902_v48 = vpack.c.bf16 %v279_v38, %v275_v37  ;;  %2057 = vmatpush1.bf16.msra.mxu1 %v2883_v39  ;;  %v283_v49 = vld [vmem:[%s2812_s27 + $0x148] sm:$0xff]  ;;  %v2906_v50 = vpack.c.bf16 %v264_v43, %v260_v42  ;;  %v269_v51 = vld [vmem:[%s2812_s27 + $0xd8] sm:$0xff]  ;;  %s3438_s9 = smov (!%p311_p8, %s879_s9), %s880_s10  ;;  %s1260_s22 = ssub.s32 18, %s2803_s19 }
  0x27   : > { %v278_v46 = vld [vmem:[%s2812_s27 + $0x120] sm:$0xff]  ;;  %v273_v52 = vld [vmem:[%s2812_s27 + $0xf8] sm:$0xff]  ;;  %v287_v53 = vld [vmem:[%s2812_s27 + $0x168] sm:$0xff]  ;;  %s3440_s23 = smov (!%p311_p8, %s1259_s23), %s1260_s22  ;;  %s1639_s12 = sadd.s32 7, %s2803_s19 }
  0x28   : > { %2059 = vmatprep.subr.bf16.mxu1 %v2897_v47  ;;  %v2912_v54 = vpack.c.bf16 %v273_v52, %v269_v51  ;;  %v268_v55 = vld [vmem:[%s2812_s27 + $0xd0] sm:$0xff]  ;;  %v2926_v57 = vpack.c.bf16 %v278_v46, %v274_v45  ;;  %v277_v58 = vld [vmem:[%s2812_s27 + $0x118] sm:$0xff]  ;;  %v2933_v60 = vpack.c.bf16 %v287_v53, %v283_v49  ;;  %v282_v61 = vld [vmem:[%s2812_s27 + $0x140] sm:$0xff]  ;;  %v1627_v52 = vstv %s3434_s28  ;;  %s1640_s20 = ssub.s32 16, %s2803_s19 }
  0x29   : > { %2029 = vmatpush1.bf16.msra.mxu0 %v2866_v28  ;;  %v272_v56 = vld [vmem:[%s2812_s27 + $0xf0] sm:$0xff]  ;;  %v281_v59 = vld [vmem:[%s2812_s27 + $0x138] sm:$0xff]  ;;  %v286_v62 = vld [vmem:[%s2812_s27 + $0x160] sm:$0xff]  ;;  %s3442_s12 = smov (!%p311_p8, %s1639_s12), %s1640_s20 }
  0x2a   : > { %2031 = vmatprep.subr.bf16.mxu0 %v2873_v32  ;;  %2061 = vmatpush1.bf16.msra.mxu1 %v2906_v50  ;;  %v291_v63 = vld [vmem:[%s2812_s27 + $0x188] sm:$0xff]  ;;  %v2939_v0 = vpack.c.bf16 %v272_v56, %v268_v55  ;;  %v2943_v2 = vpack.c.bf16 %v281_v59, %v277_v58  ;;  %v276_v3 = vld [vmem:[%s2812_s27 + $0x110] sm:$0xff]  ;;  %v285_v6 = vld [vmem:[%s2812_s27 + $0x158] sm:$0xff]  ;;  %v2956_v13 = vpack.c.bf16 %v286_v62, %v282_v61 }
  0x2b   : > { %v295_v1 = vld [vmem:[%s2812_s27 + $0x1a8] sm:$0xff]  ;;  %2063 = vmatprep.subr.bf16.mxu1 %v2912_v54  ;;  %v280_v5 = vld [vmem:[%s2812_s27 + $0x130] sm:$0xff]  ;;  %v289_v7 = vld [vmem:[%s2812_s27 + $0x178] sm:$0xff] }
  0x2c   : > { %v290_v15 = vld [vmem:[%s2812_s27 + $0x180] sm:$0xff]  ;;  %v2962_v17 = vpack.c.bf16 %v295_v1, %v291_v63  ;;  %v299_v20 = vld [vmem:[%s2812_s27 + $0x1c8] sm:$0xff]  ;;  %v2967_v21 = vpack.c.bf16 %v280_v5, %v276_v3  ;;  %v2976_v25 = vpack.c.bf16 %v289_v7, %v285_v6  ;;  %v284_v26 = vld [vmem:[%s2812_s27 + $0x150] sm:$0xff] }
  0x2d   : > { %2033 = vmatpush1.bf16.msra.mxu0 %v2893_v44  ;;  %v294_v18 = vld [vmem:[%s2812_s27 + $0x1a0] sm:$0xff]  ;;  %v303_v23 = vld [vmem:[%s2812_s27 + $0x1e8] sm:$0xff]  ;;  %v288_v29 = vld [vmem:[%s2812_s27 + $0x170] sm:$0xff] }
  0x2e   : > { %2035 = vmatprep.subr.bf16.mxu0 %v2902_v48  ;;  %2065 = vmatpush1.bf16.msra.mxu1 %v2939_v0  ;;  %v2972_v22 = vld [vmem:[%s3415_s0] sm:$0xff]  ;;  %v293_v30 = vld [vmem:[%s2812_s27 + $0x198] sm:$0xff]  ;;  %v2991_v36 = vpack.c.bf16 %v294_v18, %v290_v15  ;;  %v2994_v37 = vpack.c.bf16 %v303_v23, %v299_v20  ;;  %v2999_v41 = vpack.c.bf16 %v288_v29, %v284_v26  ;;  %v292_v45 = vld [vmem:[%s2812_s27 + $0x190] sm:$0xff] }
  0x2f   : > { %2067 = vmatprep.subr.bf16.mxu1 %v2943_v2  ;;  %vm489_vm0 = vcmp.lt.s32.totalorder %v488_v11, %v2972_v22  ;;  %vm678_vm1 = vcmp.lt.s32.totalorder %v677_v12, %v2972_v22  ;;  %v297_v31 = vld [vmem:[%s2812_s27 + $0x1b8] sm:$0xff]  ;;  %v298_v38 = vld [vmem:[%s2812_s27 + $0x1c0] sm:$0xff]  ;;  %v296_v46 = vld [vmem:[%s2812_s27 + $0x1b0] sm:$0xff]  ;;  %vm1248_vm2 = vcmp.lt.s32.totalorder %v1247_v34, %v2972_v22  ;;  %vm1628_vm3 = vcmp.lt.s32.totalorder %v1627_v52, %v2972_v22 }
  0x30   : > { %v490_v33 = vsel %vm489_vm0, 1, %v2747_v14  ;;  %v302_v40 = vld [vmem:[%s2812_s27 + $0x1e0] sm:$0xff]  ;;  %v679_v42 = vsel %vm678_vm1, 1, %v2747_v14  ;;  %v3004_v43 = vpack.c.bf16 %v297_v31, %v293_v30  ;;  %v301_v49 = vld [vmem:[%s2812_s27 + $0x1d8] sm:$0xff]  ;;  %v3017_v55 = vpack.c.bf16 %v296_v46, %v292_v45  ;;  %v300_v59 = vld [vmem:[%s2812_s27 + $0x1d0] sm:$0xff] }
  0x31   : > { %2037 = vmatpush1.bf16.msra.mxu0 %v2926_v57  ;;  %492 = vperm.xlu0 %2575, %v490_v33   ;;  %v305_v51 = vld [vmem:[%s2812_s27 + $0x1f8] sm:$0xff]  ;;  %v3013_v53 = vpack.c.bf16 %v302_v40, %v298_v38  ;;  %v1249_v56 = vsel %vm1248_vm2, 1, %v2747_v14  ;;  %v304_v61 = vld [vmem:[%s2812_s27 + $0x1f0] sm:$0xff]  ;;  %v3030_v62 = vld [vmem:[%s3027_s7] sm:$0xff]  ;;  %v1629_v1 = vsel %vm1628_vm3, 1, %v2747_v14  ;;  %s689_s27 = sadd.s32 2, %s2803_s19 }
  0x32   : > { %2039 = vmatprep.subr.bf16.mxu0 %v2933_v60  ;;  %2069 = vmatpush1.bf16.msra.mxu1 %v2967_v21  ;;  %v3021_v58 = vpack.c.bf16 %v305_v51, %v301_v49  ;;  %v3033_v63 = vpack.c.bf16 %v304_v61, %v300_v59  ;;  %v314_v3 = vld [vmem:[%s2817_s6] sm:$0xff]  ;;  %v315_v5 = vld [vmem:[%s2817_s6 + $0x8] sm:$0xff]  ;;  %v317_v20 = vld [vmem:[%s2817_s6 + $0x18] sm:$0xff]  ;;  %s3436_s27 = smov (!%p311_p8, %s689_s27), %s690_s8 }
  0x33   : > { %2071 = vmatprep.subr.bf16.mxu1 %v2976_v25  ;;  %v316_v30 = vld [vmem:[%s2817_s6 + $0x10] sm:$0xff]  ;;  %v309_v49 = vld [vmem:[%s3027_s7 + $0x8] sm:$0xff] }
  0x35   : > { %2041 = vmatpush1.bf16.msra.mxu0 %v2956_v13  ;;  %681 = vperm.xlu0 %2575, %v679_v42  }
  0x36   : > { %2043 = vmatprep.subr.bf16.mxu0 %v2962_v17  ;;  %2073 = vmatpush1.bf16.msra.mxu1 %v2999_v41 }
  0x37   : > { %2075 = vmatprep.subr.bf16.mxu1 %v3004_v43 }
  0x39   : > { %2045 = vmatpush1.bf16.msra.mxu0 %v2991_v36  ;;  %1251 = vperm.xlu0 %2575, %v1249_v56  }
  0x3a   : > { %2047 = vmatprep.subr.bf16.mxu0 %v2994_v37  ;;  %2077 = vmatpush1.bf16.msra.mxu1 %v3017_v55 }
  0x3b   : > { %2079 = vmatprep.subr.bf16.mxu1 %v3021_v58 }
  0x3d   : > { %2049 = vmatpush1.bf16.msra.mxu0 %v3013_v53  ;;  %1631 = vperm.xlu0 %2575, %v1629_v1  }
  0x3e   : > { %2083 = vmatprep.subr.bf16.mxu0 %v2829_v4  ;;  %2081 = vmatpush1.bf16.msra.mxu1 %v3033_v63 }
  0x3f   : > { %2115 = vmatprep.subr.bf16.mxu1 %v2859_v24 }
  0x40   : > { %383 = vmatmul.mubr.f32.vlgmr.msra.gmra.mrb[0].mxu0 %v3030_v62 }
  0x41   : > { %2085 = vmatpush1.bf16.msra.mxu0 %v2836_v9  ;;  %571 = vmatprep.mubr.f32.mxu0 %v2746_v8 }
  0x42   : > { %2087 = vmatprep.subr.bf16.mxu0 %v2838_v10  ;;  %454 = vmatmul.mubr.f32.vlgmr.msra.gmra.mrb[0].mxu1 %v3030_v62 }
  0x43   : > { %2117 = vmatpush1.bf16.msra.mxu1 %v2863_v27  ;;  %642 = vmatprep.mubr.f32.mxu1 %v2746_v8 }
  0x44   : > { %2119 = vmatprep.subr.bf16.mxu1 %v2878_v35 }
  0x45   : > { %2089 = vmatpush1.bf16.msra.mxu0 %v2848_v16 }
  0x46   : > { %2091 = vmatprep.subr.bf16.mxu0 %v2853_v19 }
  0x47   : > { %2121 = vmatpush1.bf16.msra.mxu1 %v2883_v39 }
  0x48   : > { %2123 = vmatprep.subr.bf16.mxu1 %v2897_v47 }
  0x49   : > { %2093 = vmatpush1.bf16.msra.mxu0 %v2866_v28 }
  0x4a   : > { %2095 = vmatprep.subr.bf16.mxu0 %v2873_v32 }
  0x4b   : > { %2125 = vmatpush1.bf16.msra.mxu1 %v2906_v50 }
  0x4c   : > { %2127 = vmatprep.subr.bf16.mxu1 %v2912_v54 }
  0x4d   : > { %2097 = vmatpush1.bf16.msra.mxu0 %v2893_v44 }
  0x4e   : > { %2099 = vmatprep.subr.bf16.mxu0 %v2902_v48 }
  0x4f   : > { %2129 = vmatpush1.bf16.msra.mxu1 %v2939_v0 }
  0x50   : > { %2131 = vmatprep.subr.bf16.mxu1 %v2943_v2 }
  0x51   : > { %2101 = vmatpush1.bf16.msra.mxu0 %v2926_v57 }
  0x52   : > { %2103 = vmatprep.subr.bf16.mxu0 %v2933_v60 }
  0x53   : > { %2133 = vmatpush1.bf16.msra.mxu1 %v2967_v21 }
  0x54   : > { %2135 = vmatprep.subr.bf16.mxu1 %v2976_v25 }
  0x55   : > { %2105 = vmatpush1.bf16.msra.mxu0 %v2956_v13 }
  0x56   : > { %2107 = vmatprep.subr.bf16.mxu0 %v2962_v17 }
  0x57   : > { %2137 = vmatpush1.bf16.msra.mxu1 %v2999_v41 }
  0x58   : > { %2139 = vmatprep.subr.bf16.mxu1 %v3004_v43 }
  0x59   : > { %2109 = vmatpush1.bf16.msra.mxu0 %v2991_v36 }
  0x5a   : > { %2111 = vmatprep.subr.bf16.mxu0 %v2994_v37 }
  0x5b   : > { %2141 = vmatpush1.bf16.msra.mxu1 %v3017_v55 }
  0x5c   : > { %2143 = vmatprep.subr.bf16.mxu1 %v3021_v58 }
  0x5d   : > { %2113 = vmatpush1.bf16.msra.mxu0 %v3013_v53 }
  0x5e   : > { %2147 = vmatprep.subr.bf16.mxu0 %v2829_v4 }
  0x5f   : > { %2145 = vmatpush1.bf16.msra.mxu1 %v3033_v63 }
  0x60   : > { %2179 = vmatprep.subr.bf16.mxu1 %v2859_v24 }
  0xb0   : > { %v493_v56 = vpop.permute.xlu0 %492 }
  0xb1   : > { %vm494_vm4 = vcmp.eq.s32.totalorder %v493_v56, 1  ;;  %v1962_v56 = vld [vmem:[%s2817_s6 + $0x38] sm:$0xff] }
 0x113   : > { %v384_v6 = vpop.f32.mrb[0].mxu0 }
 0x114   : > { %v460_v7 = vadd.f32 %v384_v6, %v314_v3  ;;  %v386_v11 = vpop.f32.mrb[1].mxu0 }
 0x115   : > { %v461_v12 = vadd.f32 %v386_v11, %v315_v5  ;;  %v455_v23 = vpop.f32.mrb[0].mxu1 }
 0x116   : > { %v1956_v15 = vmul.f32 -1.442695, %v460_v7  ;;  %v457_v26 = vpop.f32.mrb[1].mxu1  ;;  %v462_v33 = vadd.f32 %v455_v23, %v316_v30 }
 0x117   : > { %v1957_v18 = vmul.f32 -1.442695, %v461_v12  ;;  %v463_v29 = vadd.f32 %v457_v26, %v317_v20  ;;  %v1057_v20 = vstv %s3438_s9  ;;  %v1437_v26 = vstv %s3440_s23 }
 0x118   : > { %2577 = vpow2.f32 %v1956_v15  ;;  %vm1058_vm6 = vcmp.lt.s32.totalorder %v1057_v20, %v2972_v22  ;;  %vm1438_vm7 = vcmp.lt.s32.totalorder %v1437_v26, %v2972_v22 }
 0x119   : > { %2579 = vpow2.f32 %v1957_v18  ;;  %v1958_v31 = vmul.f32 -1.442695, %v463_v29  ;;  %v1059_v23 = vsel %vm1058_vm6, 1, %v2747_v14  ;;  %v1817_v29 = vstv %s3442_s12 }
 0x11a   : > { %v1439_v30 = vsel %vm1438_vm7, 1, %v2747_v14  ;;  %vm1818_vm8 = vcmp.lt.s32.totalorder %v1817_v29, %v2972_v22  ;;  %v682_v29 = vpop.permute.xlu0 %681 }
 0x11b   : > { %2581 = vpow2.f32 %v1958_v31  ;;  %v1819_v31 = vsel %vm1818_vm8, 1, %v2747_v14  ;;  %vm683_vm9 = vcmp.eq.s32.totalorder %v682_v29, 1 }
 0x11c   : > { %2583 = vtanh.f32 %v462_v33  ;;  %v1959_v33 = vld [vmem:[%s2817_s6 + $0x20] sm:$0xff] }
 0x122   : > { %v2578_v34 = vpop.eup %2577 }
 0x123   : > { %v2580_v38 = vpop.eup %2579  ;;  %v467_v40 = vadd.f32 1.0, %v2578_v34  ;;  %v1960_v34 = vld [vmem:[%s2817_s6 + $0x28] sm:$0xff] }
 0x124   : > { %v473_v42 = vadd.f32 1.0, %v2580_v38 }
 0x125   : > { %2585 = vrcp.f32 %v467_v40  ;;  %v2582_v45 = vpop.eup %2581 }
 0x126   : > { %2587 = vrcp.f32 %v473_v42  ;;  %v2584_v46 = vpop.eup %2583  ;;  %v480_v52 = vadd.f32 1.0, %v2582_v45 }
 0x128   : > { %2589 = vrcp.f32 %v480_v52 }
 0x12f   : > { %v2586_v51 = vpop.eup %2585 }
 0x130   : > { %v2588_v59 = vpop.eup %2587  ;;  %v484_v61 = vmul.f32 %v2586_v51, %v2584_v46 }
 0x131   : > { %v483_v1 = vmul.f32 %v2588_v59, %v309_v49 }
 0x132   : > { %v2590_v6 = vpop.eup %2589 }
 0x133   : > { %v485_v3 = vadd.f32 %v484_v61, %v483_v1 }
 0x135   : > { %2591 = vtanh.f32 %v485_v3  ;;  %v3081_v5 = vsel %vm494_vm4, %v485_v3, %v309_v49 }
 0x13f   : > { %v2592_v7 = vpop.eup %2591 }
 0x140   : > { %v487_v11 = vmul.f32 %v2592_v7, %v2590_v6 }
 0x142   : > { %v3084_v12 = vsel %vm494_vm4, %v487_v11, %v3030_v62  ;;  %v497_v15 = vsel %vm494_vm4, %v487_v11, 0.0  ;;  %v867_v62 = vstv %s3436_s27 }
 0x143   : > { %498 = vst [vmem:[%s2822_s11] sm:$0xff] %v497_v15  ;;  %572 = vmatmul.mubr.f32.vlgmr.msra.gmra.mrb[2].mxu0 %v3084_v12  ;;  %643 = vmatmul.mubr.f32.vlgmr.msra.gmra.mrb[2].mxu1 %v3084_v12  ;;  %vm868_vm5 = vcmp.lt.s32.totalorder %v867_v62, %v2972_v22  ;;  %v1961_v22 = vld [vmem:[%s2817_s6 + $0x30] sm:$0xff] }
 0x144   : > { %2149 = vmatpush1.bf16.msra.mxu0 %v2836_v9  ;;  %2181 = vmatpush1.bf16.msra.mxu1 %v2863_v27  ;;  %v869_v18 = vsel %vm868_vm5, 1, %v2747_v14 }
 0x145   : > { %2151 = vmatprep.subr.bf16.mxu0 %v2838_v10  ;;  %2183 = vmatprep.subr.bf16.mxu1 %v2878_v35 }
 0x146   : > { %761 = vmatprep.mubr.f32.mxu0 %v2746_v8  ;;  %832 = vmatprep.mubr.f32.mxu1 %v2746_v8 }
 0x147   : > { %871 = vperm.xlu1 %2576, %v869_v18  }
 0x148   : > { %2153 = vmatpush1.bf16.msra.mxu0 %v2848_v16  ;;  %2185 = vmatpush1.bf16.msra.mxu1 %v2883_v39 }
 0x149   : > { %2155 = vmatprep.subr.bf16.mxu0 %v2853_v19  ;;  %2187 = vmatprep.subr.bf16.mxu1 %v2897_v47 }
 0x14b   : > { %1061 = vperm.xlu1 %2576, %v1059_v23  }
 0x14c   : > { %2157 = vmatpush1.bf16.msra.mxu0 %v2866_v28  ;;  %2189 = vmatpush1.bf16.msra.mxu1 %v2906_v50 }
 0x14d   : > { %2159 = vmatprep.subr.bf16.mxu0 %v2873_v32  ;;  %2191 = vmatprep.subr.bf16.mxu1 %v2912_v54 }
 0x14f   : > { %1441 = vperm.xlu1 %2576, %v1439_v30  }
 0x150   : > { %2161 = vmatpush1.bf16.msra.mxu0 %v2893_v44  ;;  %2193 = vmatpush1.bf16.msra.mxu1 %v2939_v0 }
 0x151   : > { %2163 = vmatprep.subr.bf16.mxu0 %v2902_v48  ;;  %2195 = vmatprep.subr.bf16.mxu1 %v2943_v2 }
 0x153   : > { %1821 = vperm.xlu1 %2576, %v1819_v31  }
 0x154   : > { %2165 = vmatpush1.bf16.msra.mxu0 %v2926_v57  ;;  %2197 = vmatpush1.bf16.msra.mxu1 %v2967_v21 }
 0x155   : > { %2167 = vmatprep.subr.bf16.mxu0 %v2933_v60  ;;  %2199 = vmatprep.subr.bf16.mxu1 %v2976_v25 }
 0x158   : > { %2169 = vmatpush1.bf16.msra.mxu0 %v2956_v13  ;;  %2201 = vmatpush1.bf16.msra.mxu1 %v2999_v41 }
 0x159   : > { %2171 = vmatprep.subr.bf16.mxu0 %v2962_v17  ;;  %2203 = vmatprep.subr.bf16.mxu1 %v3004_v43 }
 0x15c   : > { %2173 = vmatpush1.bf16.msra.mxu0 %v2991_v36  ;;  %2205 = vmatpush1.bf16.msra.mxu1 %v3017_v55 }
 0x15d   : > { %2175 = vmatprep.subr.bf16.mxu0 %v2994_v37  ;;  %2207 = vmatprep.subr.bf16.mxu1 %v3021_v58 }
 0x160   : > { %2177 = vmatpush1.bf16.msra.mxu0 %v3013_v53  ;;  %2209 = vmatpush1.bf16.msra.mxu1 %v3033_v63 }
 0x161   : > { %2211 = vmatprep.subr.bf16.mxu0 %v2829_v4  ;;  %2243 = vmatprep.subr.bf16.mxu1 %v2859_v24 }
 0x216   : > { %v573_v38 = vpop.f32.mrb[2].mxu0  ;;  %v644_v40 = vpop.f32.mrb[2].mxu1 }
 0x217   : > { %v649_v42 = vadd.f32 %v1959_v33, %v573_v38  ;;  %v575_v45 = vpop.f32.mrb[3].mxu0  ;;  %v646_v46 = vpop.f32.mrb[3].mxu1  ;;  %v651_v1 = vadd.f32 %v1961_v22, %v644_v40 }
 0x218   : > { %v650_v49 = vadd.f32 %v1960_v34, %v575_v45  ;;  %v652_v59 = vadd.f32 %v1962_v56, %v646_v46 }
 0x219   : > { %v1963_v51 = vmul.f32 -1.442695, %v649_v42 }
 0x21a   : > { %v1964_v52 = vmul.f32 -1.442695, %v650_v49  ;;  %v1965_v61 = vmul.f32 -1.442695, %v652_v59 }
 0x21b   : > { %2593 = vpow2.f32 %v1963_v51 }
 0x21c   : > { %2595 = vpow2.f32 %v1964_v52 }
 0x21d   : > { %2597 = vpow2.f32 %v1965_v61  ;;  %v1970_v61 = vld [vmem:[%s2817_s6 + $0x58] sm:$0xff] }
 0x21e   : > { %2599 = vtanh.f32 %v651_v1 }
 0x225   : > { %v2594_v14 = vpop.eup %2593 }
 0x226   : > { %v2596_v3 = vpop.eup %2595  ;;  %v656_v6 = vadd.f32 1.0, %v2594_v14  ;;  %v1969_v14 = vld [vmem:[%s2817_s6 + $0x50] sm:$0xff] }
 0x227   : > { %v662_v7 = vadd.f32 1.0, %v2596_v3  ;;  %v2598_v11 = vpop.eup %2597 }
 0x228   : > { %2601 = vrcp.f32 %v656_v6  ;;  %v2600_v15 = vpop.eup %2599  ;;  %v669_v23 = vadd.f32 1.0, %v2598_v11 }
 0x229   : > { %2603 = vrcp.f32 %v662_v7 }
 0x22a   : > { %2605 = vrcp.f32 %v669_v23 }
 0x232   : > { %v2602_v62 = vpop.eup %2601 }
 0x233   : > { %v2604_v18 = vpop.eup %2603  ;;  %v673_v20 = vmul.f32 %v2602_v62, %v2600_v15 }
 0x234   : > { %v672_v26 = vmul.f32 %v2604_v18, %v3081_v5  ;;  %v2606_v33 = vpop.eup %2605 }
 0x236   : > { %v674_v30 = vadd.f32 %v673_v20, %v672_v26  ;;  %v872_v26 = vpop.permute.xlu1 %871 }
 0x237   : > { %vm873_vm10 = vcmp.eq.s32.totalorder %v872_v26, 1 }
 0x238   : > { %2607 = vtanh.f32 %v674_v30  ;;  %v3153_v31 = vsel %vm683_vm9, %v674_v30, %v3081_v5  ;;  %v1967_v5 = vld [vmem:[%s2817_s6 + $0x40] sm:$0xff] }
 0x242   : > { %v2608_v34 = vpop.eup %2607 }
 0x243   : > { %v676_v38 = vmul.f32 %v2608_v34, %v2606_v33 }
 0x245   : > { %v3156_v40 = vsel %vm683_vm9, %v676_v38, %v3084_v12  ;;  %v686_v42 = vsel %vm683_vm9, %v676_v38, 0.0  ;;  %v1968_v12 = vld [vmem:[%s2817_s6 + $0x48] sm:$0xff] }
 0x246   : > { %1966 = vst [vmem:[%s2822_s11 + $0x8] sm:$0xff] %v686_v42  ;;  %762 = vmatmul.mubr.f32.vlgmr.msra.gmra.mrb[4].mxu0 %v3156_v40  ;;  %833 = vmatmul.mubr.f32.vlgmr.msra.gmra.mrb[4].mxu1 %v3156_v40 }
 0x247   : > { %2213 = vmatpush1.bf16.msra.mxu0 %v2836_v9  ;;  %2245 = vmatpush1.bf16.msra.mxu1 %v2863_v27 }
 0x248   : > { %2215 = vmatprep.subr.bf16.mxu0 %v2838_v10  ;;  %2247 = vmatprep.subr.bf16.mxu1 %v2878_v35 }
 0x249   : > { %951 = vmatprep.mubr.f32.mxu0 %v2746_v8  ;;  %1022 = vmatprep.mubr.f32.mxu1 %v2746_v8 }
 0x24b   : > { %2217 = vmatpush1.bf16.msra.mxu0 %v2848_v16  ;;  %2249 = vmatpush1.bf16.msra.mxu1 %v2883_v39 }
 0x24c   : > { %2219 = vmatprep.subr.bf16.mxu0 %v2853_v19  ;;  %2251 = vmatprep.subr.bf16.mxu1 %v2897_v47 }
 0x24f   : > { %2221 = vmatpush1.bf16.msra.mxu0 %v2866_v28  ;;  %2253 = vmatpush1.bf16.msra.mxu1 %v2906_v50 }
 0x250   : > { %2223 = vmatprep.subr.bf16.mxu0 %v2873_v32  ;;  %2255 = vmatprep.subr.bf16.mxu1 %v2912_v54 }
 0x253   : > { %2225 = vmatpush1.bf16.msra.mxu0 %v2893_v44  ;;  %2257 = vmatpush1.bf16.msra.mxu1 %v2939_v0 }
 0x254   : > { %2227 = vmatprep.subr.bf16.mxu0 %v2902_v48  ;;  %2259 = vmatprep.subr.bf16.mxu1 %v2943_v2 }
 0x257   : > { %2229 = vmatpush1.bf16.msra.mxu0 %v2926_v57  ;;  %2261 = vmatpush1.bf16.msra.mxu1 %v2967_v21 }
 0x258   : > { %2231 = vmatprep.subr.bf16.mxu0 %v2933_v60  ;;  %2263 = vmatprep.subr.bf16.mxu1 %v2976_v25 }
 0x25b   : > { %2233 = vmatpush1.bf16.msra.mxu0 %v2956_v13  ;;  %2265 = vmatpush1.bf16.msra.mxu1 %v2999_v41 }
 0x25c   : > { %2235 = vmatprep.subr.bf16.mxu0 %v2962_v17  ;;  %2267 = vmatprep.subr.bf16.mxu1 %v3004_v43 }
 0x25f   : > { %2237 = vmatpush1.bf16.msra.mxu0 %v2991_v36  ;;  %2269 = vmatpush1.bf16.msra.mxu1 %v3017_v55 }
 0x260   : > { %2239 = vmatprep.subr.bf16.mxu0 %v2994_v37  ;;  %2271 = vmatprep.subr.bf16.mxu1 %v3021_v58 }
 0x263   : > { %2241 = vmatpush1.bf16.msra.mxu0 %v3013_v53  ;;  %2273 = vmatpush1.bf16.msra.mxu1 %v3033_v63 }
 0x264   : > { %2275 = vmatprep.subr.bf16.mxu0 %v2829_v4  ;;  %2307 = vmatprep.subr.bf16.mxu1 %v2859_v24 }
 0x319   : > { %v763_v45 = vpop.f32.mrb[4].mxu0  ;;  %v834_v46 = vpop.f32.mrb[4].mxu1 }
 0x31a   : > { %v839_v49 = vadd.f32 %v1967_v5, %v763_v45  ;;  %v765_v51 = vpop.f32.mrb[5].mxu0  ;;  %v836_v52 = vpop.f32.mrb[5].mxu1  ;;  %v841_v6 = vadd.f32 %v1969_v14, %v834_v46 }
 0x31b   : > { %v840_v56 = vadd.f32 %v1968_v12, %v765_v51  ;;  %v842_v1 = vadd.f32 %v1970_v61, %v836_v52 }
 0x31c   : > { %v1971_v59 = vmul.f32 -1.442695, %v839_v49 }
 0x31d   : > { %v1972_v22 = vmul.f32 -1.442695, %v840_v56  ;;  %v1973_v3 = vmul.f32 -1.442695, %v842_v1 }
 0x31e   : > { %2609 = vpow2.f32 %v1971_v59 }
 0x31f   : > { %2611 = vpow2.f32 %v1972_v22 }
 0x320   : > { %2613 = vpow2.f32 %v1973_v3  ;;  %v1978_v3 = vld [vmem:[%s2817_s6 + $0x78] sm:$0xff] }
 0x321   : > { %2615 = vtanh.f32 %v841_v6 }
 0x328   : > { %v2610_v7 = vpop.eup %2609 }
 0x329   : > { %v2612_v11 = vpop.eup %2611  ;;  %v846_v15 = vadd.f32 1.0, %v2610_v7  ;;  %v1977_v7 = vld [vmem:[%s2817_s6 + $0x70] sm:$0xff] }
 0x32a   : > { %v852_v62 = vadd.f32 1.0, %v2612_v11  ;;  %v2614_v18 = vpop.eup %2613 }
 0x32b   : > { %2617 = vrcp.f32 %v846_v15  ;;  %v2616_v20 = vpop.eup %2615  ;;  %v859_v30 = vadd.f32 1.0, %v2614_v18 }
 0x32c   : > { %2619 = vrcp.f32 %v852_v62 }
 0x32d   : > { %2621 = vrcp.f32 %v859_v30 }
 0x335   : > { %v2618_v23 = vpop.eup %2617 }
 0x336   : > { %v2620_v29 = vpop.eup %2619  ;;  %v863_v33 = vmul.f32 %v2618_v23, %v2616_v20 }
 0x337   : > { %v862_v34 = vmul.f32 %v2620_v29, %v3153_v31  ;;  %v2622_v5 = vpop.eup %2621 }
 0x339   : > { %v864_v38 = vadd.f32 %v863_v33, %v862_v34 }
 0x33b   : > { %2623 = vtanh.f32 %v864_v38  ;;  %v3201_v42 = vsel %vm873_vm10, %v864_v38, %v3153_v31  ;;  %v1975_v31 = vld [vmem:[%s2817_s6 + $0x60] sm:$0xff] }
 0x345   : > { %v2624_v12 = vpop.eup %2623 }
 0x346   : > { %v866_v45 = vmul.f32 %v2624_v12, %v2622_v5  ;;  %v1062_v12 = vpop.permute.xlu1 %1061 }
 0x347   : > { %vm1063_vm11 = vcmp.eq.s32.totalorder %v1062_v12, 1 }
 0x348   : > { %v3204_v46 = vsel %vm873_vm10, %v866_v45, %v3156_v40  ;;  %v876_v49 = vsel %vm873_vm10, %v866_v45, 0.0  ;;  %v1976_v40 = vld [vmem:[%s2817_s6 + $0x68] sm:$0xff] }
 0x349   : > { %1974 = vst [vmem:[%s2822_s11 + $0x10] sm:$0xff] %v876_v49  ;;  %952 = vmatmul.mubr.f32.vlgmr.msra.gmra.mrb[6].mxu0 %v3204_v46  ;;  %1023 = vmatmul.mubr.f32.vlgmr.msra.gmra.mrb[6].mxu1 %v3204_v46 }
 0x34a   : > { %2277 = vmatpush1.bf16.msra.mxu0 %v2836_v9  ;;  %2309 = vmatpush1.bf16.msra.mxu1 %v2863_v27 }
 0x34b   : > { %2279 = vmatprep.subr.bf16.mxu0 %v2838_v10  ;;  %2311 = vmatprep.subr.bf16.mxu1 %v2878_v35 }
 0x34c   : > { %1141 = vmatprep.mubr.f32.mxu0 %v2746_v8  ;;  %1212 = vmatprep.mubr.f32.mxu1 %v2746_v8 }
 0x34e   : > { %2281 = vmatpush1.bf16.msra.mxu0 %v2848_v16  ;;  %2313 = vmatpush1.bf16.msra.mxu1 %v2883_v39 }
 0x34f   : > { %2283 = vmatprep.subr.bf16.mxu0 %v2853_v19  ;;  %2315 = vmatprep.subr.bf16.mxu1 %v2897_v47 }
 0x352   : > { %2285 = vmatpush1.bf16.msra.mxu0 %v2866_v28  ;;  %2317 = vmatpush1.bf16.msra.mxu1 %v2906_v50 }
 0x353   : > { %2287 = vmatprep.subr.bf16.mxu0 %v2873_v32  ;;  %2319 = vmatprep.subr.bf16.mxu1 %v2912_v54 }
 0x356   : > { %2289 = vmatpush1.bf16.msra.mxu0 %v2893_v44  ;;  %2321 = vmatpush1.bf16.msra.mxu1 %v2939_v0 }
 0x357   : > { %2291 = vmatprep.subr.bf16.mxu0 %v2902_v48  ;;  %2323 = vmatprep.subr.bf16.mxu1 %v2943_v2 }
 0x35a   : > { %2293 = vmatpush1.bf16.msra.mxu0 %v2926_v57  ;;  %2325 = vmatpush1.bf16.msra.mxu1 %v2967_v21 }
 0x35b   : > { %2295 = vmatprep.subr.bf16.mxu0 %v2933_v60  ;;  %2327 = vmatprep.subr.bf16.mxu1 %v2976_v25 }
 0x35e   : > { %2297 = vmatpush1.bf16.msra.mxu0 %v2956_v13  ;;  %2329 = vmatpush1.bf16.msra.mxu1 %v2999_v41 }
 0x35f   : > { %2299 = vmatprep.subr.bf16.mxu0 %v2962_v17  ;;  %2331 = vmatprep.subr.bf16.mxu1 %v3004_v43 }
 0x362   : > { %2301 = vmatpush1.bf16.msra.mxu0 %v2991_v36  ;;  %2333 = vmatpush1.bf16.msra.mxu1 %v3017_v55 }
 0x363   : > { %2303 = vmatprep.subr.bf16.mxu0 %v2994_v37  ;;  %2335 = vmatprep.subr.bf16.mxu1 %v3021_v58 }
 0x366   : > { %2305 = vmatpush1.bf16.msra.mxu0 %v3013_v53  ;;  %2337 = vmatpush1.bf16.msra.mxu1 %v3033_v63 }
 0x367   : > { %2339 = vmatprep.subr.bf16.mxu0 %v2829_v4  ;;  %2371 = vmatprep.subr.bf16.mxu1 %v2859_v24 }
 0x41c   : > { %v953_v51 = vpop.f32.mrb[6].mxu0  ;;  %v1024_v52 = vpop.f32.mrb[6].mxu1 }
 0x41d   : > { %v1029_v56 = vadd.f32 %v1975_v31, %v953_v51  ;;  %v955_v59 = vpop.f32.mrb[7].mxu0  ;;  %v1026_v22 = vpop.f32.mrb[7].mxu1  ;;  %v1031_v15 = vadd.f32 %v1977_v7, %v1024_v52 }
 0x41e   : > { %v1030_v61 = vadd.f32 %v1976_v40, %v955_v59  ;;  %v1032_v6 = vadd.f32 %v1978_v3, %v1026_v22 }
 0x41f   : > { %v1979_v1 = vmul.f32 -1.442695, %v1029_v56 }
 0x420   : > { %v1980_v14 = vmul.f32 -1.442695, %v1030_v61  ;;  %v1981_v11 = vmul.f32 -1.442695, %v1032_v6 }
 0x421   : > { %2625 = vpow2.f32 %v1979_v1 }
 0x422   : > { %2627 = vpow2.f32 %v1980_v14 }
 0x423   : > { %2629 = vpow2.f32 %v1981_v11  ;;  %v1986_v11 = vld [vmem:[%s2817_s6 + $0x98] sm:$0xff] }
 0x424   : > { %2631 = vtanh.f32 %v1031_v15 }
 0x42b   : > { %v2626_v62 = vpop.eup %2625 }
 0x42c   : > { %v2628_v18 = vpop.eup %2627  ;;  %v1036_v20 = vadd.f32 1.0, %v2626_v62  ;;  %v1985_v62 = vld [vmem:[%s2817_s6 + $0x90] sm:$0xff] }
 0x42d   : > { %v1042_v23 = vadd.f32 1.0, %v2628_v18  ;;  %v2630_v26 = vpop.eup %2629 }
 0x42e   : > { %2633 = vrcp.f32 %v1036_v20  ;;  %v2632_v29 = vpop.eup %2631  ;;  %v1049_v38 = vadd.f32 1.0, %v2630_v26 }
 0x42f   : > { %2635 = vrcp.f32 %v1042_v23 }
 0x430   : > { %2637 = vrcp.f32 %v1049_v38 }
 0x438   : > { %v2634_v30 = vpop.eup %2633 }
 0x439   : > { %v2636_v33 = vpop.eup %2635  ;;  %v1053_v34 = vmul.f32 %v2634_v30, %v2632_v29 }
 0x43a   : > { %v1052_v5 = vmul.f32 %v2636_v33, %v3201_v42  ;;  %v2638_v31 = vpop.eup %2637 }
 0x43c   : > { %v1054_v45 = vadd.f32 %v1053_v34, %v1052_v5 }
 0x43e   : > { %2639 = vtanh.f32 %v1054_v45  ;;  %v3249_v49 = vsel %vm1063_vm11, %v1054_v45, %v3201_v42  ;;  %v1983_v42 = vld [vmem:[%s2817_s6 + $0x80] sm:$0xff] }
 0x448   : > { %v2640_v40 = vpop.eup %2639 }
 0x449   : > { %v1056_v51 = vmul.f32 %v2640_v40, %v2638_v31  ;;  %v1252_v40 = vpop.permute.xlu0 %1251 }
 0x44a   : > { %vm1253_vm12 = vcmp.eq.s32.totalorder %v1252_v40, 1 }
 0x44b   : > { %v3252_v52 = vsel %vm1063_vm11, %v1056_v51, %v3204_v46  ;;  %v1066_v56 = vsel %vm1063_vm11, %v1056_v51, 0.0  ;;  %v1984_v46 = vld [vmem:[%s2817_s6 + $0x88] sm:$0xff] }
 0x44c   : > { %1982 = vst [vmem:[%s2822_s11 + $0x18] sm:$0xff] %v1066_v56  ;;  %1142 = vmatmul.mubr.f32.vlgmr.msra.gmra.mrb[8].mxu0 %v3252_v52  ;;  %1213 = vmatmul.mubr.f32.vlgmr.msra.gmra.mrb[8].mxu1 %v3252_v52 }
 0x44d   : > { %2341 = vmatpush1.bf16.msra.mxu0 %v2836_v9  ;;  %2373 = vmatpush1.bf16.msra.mxu1 %v2863_v27 }
 0x44e   : > { %2343 = vmatprep.subr.bf16.mxu0 %v2838_v10  ;;  %2375 = vmatprep.subr.bf16.mxu1 %v2878_v35 }
 0x44f   : > { %1331 = vmatprep.mubr.f32.mxu0 %v2746_v8  ;;  %1402 = vmatprep.mubr.f32.mxu1 %v2746_v8 }
 0x451   : > { %2345 = vmatpush1.bf16.msra.mxu0 %v2848_v16  ;;  %2377 = vmatpush1.bf16.msra.mxu1 %v2883_v39 }
 0x452   : > { %2347 = vmatprep.subr.bf16.mxu0 %v2853_v19  ;;  %2379 = vmatprep.subr.bf16.mxu1 %v2897_v47 }
 0x455   : > { %2349 = vmatpush1.bf16.msra.mxu0 %v2866_v28  ;;  %2381 = vmatpush1.bf16.msra.mxu1 %v2906_v50 }
 0x456   : > { %2351 = vmatprep.subr.bf16.mxu0 %v2873_v32  ;;  %2383 = vmatprep.subr.bf16.mxu1 %v2912_v54 }
 0x459   : > { %2353 = vmatpush1.bf16.msra.mxu0 %v2893_v44  ;;  %2385 = vmatpush1.bf16.msra.mxu1 %v2939_v0 }
 0x45a   : > { %2355 = vmatprep.subr.bf16.mxu0 %v2902_v48  ;;  %2387 = vmatprep.subr.bf16.mxu1 %v2943_v2 }
 0x45d   : > { %2357 = vmatpush1.bf16.msra.mxu0 %v2926_v57  ;;  %2389 = vmatpush1.bf16.msra.mxu1 %v2967_v21 }
 0x45e   : > { %2359 = vmatprep.subr.bf16.mxu0 %v2933_v60  ;;  %2391 = vmatprep.subr.bf16.mxu1 %v2976_v25 }
 0x461   : > { %2361 = vmatpush1.bf16.msra.mxu0 %v2956_v13  ;;  %2393 = vmatpush1.bf16.msra.mxu1 %v2999_v41 }
 0x462   : > { %2363 = vmatprep.subr.bf16.mxu0 %v2962_v17  ;;  %2395 = vmatprep.subr.bf16.mxu1 %v3004_v43 }
 0x465   : > { %2365 = vmatpush1.bf16.msra.mxu0 %v2991_v36  ;;  %2397 = vmatpush1.bf16.msra.mxu1 %v3017_v55 }
 0x466   : > { %2367 = vmatprep.subr.bf16.mxu0 %v2994_v37  ;;  %2399 = vmatprep.subr.bf16.mxu1 %v3021_v58 }
 0x469   : > { %2369 = vmatpush1.bf16.msra.mxu0 %v3013_v53  ;;  %2401 = vmatpush1.bf16.msra.mxu1 %v3033_v63 }
 0x46a   : > { %2403 = vmatprep.subr.bf16.mxu0 %v2829_v4  ;;  %2435 = vmatprep.subr.bf16.mxu1 %v2859_v24 }
 0x51f   : > { %v1143_v59 = vpop.f32.mrb[8].mxu0  ;;  %v1214_v22 = vpop.f32.mrb[8].mxu1 }
 0x520   : > { %v1219_v61 = vadd.f32 %v1983_v42, %v1143_v59  ;;  %v1145_v1 = vpop.f32.mrb[9].mxu0  ;;  %v1216_v14 = vpop.f32.mrb[9].mxu1  ;;  %v1221_v20 = vadd.f32 %v1985_v62, %v1214_v22 }
 0x521   : > { %v1220_v3 = vadd.f32 %v1984_v46, %v1145_v1  ;;  %v1222_v15 = vadd.f32 %v1986_v11, %v1216_v14 }
 0x522   : > { %v1987_v6 = vmul.f32 -1.442695, %v1219_v61 }
 0x523   : > { %v1988_v7 = vmul.f32 -1.442695, %v1220_v3  ;;  %v1989_v18 = vmul.f32 -1.442695, %v1222_v15 }
 0x524   : > { %2641 = vpow2.f32 %v1987_v6 }
 0x525   : > { %2643 = vpow2.f32 %v1988_v7 }
 0x526   : > { %2645 = vpow2.f32 %v1989_v18  ;;  %v1994_v18 = vld [vmem:[%s2817_s6 + $0xb8] sm:$0xff] }
 0x527   : > { %2647 = vtanh.f32 %v1221_v20 }
 0x52e   : > { %v2642_v23 = vpop.eup %2641 }
 0x52f   : > { %v2644_v26 = vpop.eup %2643  ;;  %v1226_v29 = vadd.f32 1.0, %v2642_v23  ;;  %v1993_v23 = vld [vmem:[%s2817_s6 + $0xb0] sm:$0xff] }
 0x530   : > { %v1232_v30 = vadd.f32 1.0, %v2644_v26  ;;  %v2646_v33 = vpop.eup %2645 }
 0x531   : > { %2649 = vrcp.f32 %v1226_v29  ;;  %v2648_v34 = vpop.eup %2647  ;;  %v1239_v45 = vadd.f32 1.0, %v2646_v33 }
 0x532   : > { %2651 = vrcp.f32 %v1232_v30 }
 0x533   : > { %2653 = vrcp.f32 %v1239_v45 }
 0x53b   : > { %v2650_v38 = vpop.eup %2649 }
 0x53c   : > { %v2652_v5 = vpop.eup %2651  ;;  %v1243_v12 = vmul.f32 %v2650_v38, %v2648_v34 }
 0x53d   : > { %v1242_v31 = vmul.f32 %v2652_v5, %v3249_v49  ;;  %v2654_v42 = vpop.eup %2653 }
 0x53f   : > { %v1244_v51 = vadd.f32 %v1243_v12, %v1242_v31 }
 0x541   : > { %2655 = vtanh.f32 %v1244_v51  ;;  %v3297_v56 = vsel %vm1253_vm12, %v1244_v51, %v3249_v49  ;;  %v1991_v49 = vld [vmem:[%s2817_s6 + $0xa0] sm:$0xff]  ;;  %v1442_v51 = vpop.permute.xlu1 %1441 }
 0x542   : > { %vm1443_vm13 = vcmp.eq.s32.totalorder %v1442_v51, 1 }
 0x54b   : > { %v2656_v46 = vpop.eup %2655 }
 0x54c   : > { %v1246_v59 = vmul.f32 %v2656_v46, %v2654_v42 }
 0x54e   : > { %v3300_v22 = vsel %vm1253_vm12, %v1246_v59, %v3252_v52  ;;  %v1256_v61 = vsel %vm1253_vm12, %v1246_v59, 0.0  ;;  %v1992_v52 = vld [vmem:[%s2817_s6 + $0xa8] sm:$0xff] }
 0x54f   : > { %1990 = vst [vmem:[%s2822_s11 + $0x20] sm:$0xff] %v1256_v61  ;;  %1332 = vmatmul.mubr.f32.vlgmr.msra.gmra.mrb[10].mxu0 %v3300_v22  ;;  %1403 = vmatmul.mubr.f32.vlgmr.msra.gmra.mrb[10].mxu1 %v3300_v22 }
 0x550   : > { %2405 = vmatpush1.bf16.msra.mxu0 %v2836_v9  ;;  %2437 = vmatpush1.bf16.msra.mxu1 %v2863_v27 }
 0x551   : > { %2407 = vmatprep.subr.bf16.mxu0 %v2838_v10  ;;  %2439 = vmatprep.subr.bf16.mxu1 %v2878_v35 }
 0x552   : > { %1521 = vmatprep.mubr.f32.mxu0 %v2746_v8  ;;  %1592 = vmatprep.mubr.f32.mxu1 %v2746_v8 }
 0x554   : > { %2409 = vmatpush1.bf16.msra.mxu0 %v2848_v16  ;;  %2441 = vmatpush1.bf16.msra.mxu1 %v2883_v39 }
 0x555   : > { %2411 = vmatprep.subr.bf16.mxu0 %v2853_v19  ;;  %2443 = vmatprep.subr.bf16.mxu1 %v2897_v47 }
 0x558   : > { %2413 = vmatpush1.bf16.msra.mxu0 %v2866_v28  ;;  %2445 = vmatpush1.bf16.msra.mxu1 %v2906_v50 }
 0x559   : > { %2415 = vmatprep.subr.bf16.mxu0 %v2873_v32  ;;  %2447 = vmatprep.subr.bf16.mxu1 %v2912_v54 }
 0x55c   : > { %2417 = vmatpush1.bf16.msra.mxu0 %v2893_v44  ;;  %2449 = vmatpush1.bf16.msra.mxu1 %v2939_v0 }
 0x55d   : > { %2419 = vmatprep.subr.bf16.mxu0 %v2902_v48  ;;  %2451 = vmatprep.subr.bf16.mxu1 %v2943_v2 }
 0x560   : > { %2421 = vmatpush1.bf16.msra.mxu0 %v2926_v57  ;;  %2453 = vmatpush1.bf16.msra.mxu1 %v2967_v21 }
 0x561   : > { %2423 = vmatprep.subr.bf16.mxu0 %v2933_v60  ;;  %2455 = vmatprep.subr.bf16.mxu1 %v2976_v25 }
 0x564   : > { %2425 = vmatpush1.bf16.msra.mxu0 %v2956_v13  ;;  %2457 = vmatpush1.bf16.msra.mxu1 %v2999_v41 }
 0x565   : > { %2427 = vmatprep.subr.bf16.mxu0 %v2962_v17  ;;  %2459 = vmatprep.subr.bf16.mxu1 %v3004_v43 }
 0x568   : > { %2429 = vmatpush1.bf16.msra.mxu0 %v2991_v36  ;;  %2461 = vmatpush1.bf16.msra.mxu1 %v3017_v55 }
 0x569   : > { %2431 = vmatprep.subr.bf16.mxu0 %v2994_v37  ;;  %2463 = vmatprep.subr.bf16.mxu1 %v3021_v58 }
 0x56c   : > { %2433 = vmatpush1.bf16.msra.mxu0 %v3013_v53  ;;  %2465 = vmatpush1.bf16.msra.mxu1 %v3033_v63 }
 0x56d   : > { %2467 = vmatprep.subr.bf16.mxu0 %v2829_v4  ;;  %2499 = vmatprep.subr.bf16.mxu1 %v2859_v24 }
 0x622   : > { %v1333_v1 = vpop.f32.mrb[10].mxu0  ;;  %v1404_v14 = vpop.f32.mrb[10].mxu1 }
 0x623   : > { %v1409_v3 = vadd.f32 %v1991_v49, %v1333_v1  ;;  %v1335_v6 = vpop.f32.mrb[11].mxu0  ;;  %v1406_v7 = vpop.f32.mrb[11].mxu1  ;;  %v1411_v4 = vadd.f32 %v1993_v23, %v1404_v14 }
 0x624   : > { %v1410_v11 = vadd.f32 %v1992_v52, %v1335_v6  ;;  %v1412_v20 = vadd.f32 %v1994_v18, %v1406_v7  ;;  %v2008_v6 = vld [vmem:[%s2817_s6 + $0xe8] sm:$0xff] }
 0x625   : > { %v1995_v15 = vmul.f32 -1.442695, %v1409_v3  ;;  %v2007_v3 = vld [vmem:[%s2817_s6 + $0xe0] sm:$0xff] }
 0x626   : > { %v1996_v62 = vmul.f32 -1.442695, %v1410_v11  ;;  %v1997_v26 = vmul.f32 -1.442695, %v1412_v20 }
 0x627   : > { %2657 = vpow2.f32 %v1995_v15 }
 0x628   : > { %2659 = vpow2.f32 %v1996_v62 }
 0x629   : > { %2661 = vpow2.f32 %v1997_v26 }
 0x62a   : > { %2663 = vtanh.f32 %v1411_v4  ;;  %v2010_v4 = vld [vmem:[%s2817_s6 + $0xf8] sm:$0xff] }
 0x631   : > { %v2658_v29 = vpop.eup %2657 }
 0x632   : > { %v2660_v30 = vpop.eup %2659  ;;  %v1416_v24 = vadd.f32 1.0, %v2658_v29 }
 0x633   : > { %v1422_v33 = vadd.f32 1.0, %v2660_v30  ;;  %v2662_v34 = vpop.eup %2661  ;;  %v2009_v30 = vld [vmem:[%s2817_s6 + $0xf0] sm:$0xff] }
 0x634   : > { %2665 = vrcp.f32 %v1416_v24  ;;  %v2664_v38 = vpop.eup %2663  ;;  %v1429_v31 = vadd.f32 1.0, %v2662_v34 }
 0x635   : > { %2667 = vrcp.f32 %v1422_v33 }
 0x636   : > { %2669 = vrcp.f32 %v1429_v31 }
 0x63e   : > { %v2666_v5 = vpop.eup %2665 }
 0x63f   : > { %v2668_v12 = vpop.eup %2667  ;;  %v1433_v45 = vmul.f32 %v2666_v5, %v2664_v38 }
 0x640   : > { %v1432_v40 = vmul.f32 %v2668_v12, %v3297_v56  ;;  %v2670_v59 = vpop.eup %2669 }
 0x642   : > { %v1434_v42 = vadd.f32 %v1433_v45, %v1432_v40 }
 0x644   : > { %2671 = vtanh.f32 %v1434_v42  ;;  %v3345_v46 = vsel %vm1443_vm13, %v1434_v42, %v3297_v56 }
 0x64e   : > { %v2672_v61 = vpop.eup %2671 }
 0x64f   : > { %v1436_v49 = vmul.f32 %v2672_v61, %v2670_v59  ;;  %v1822_v59 = vpop.permute.xlu1 %1821 }
 0x650   : > { %vm1823_vm15 = vcmp.eq.s32.totalorder %v1822_v59, 1 }
 0x651   : > { %v3348_v52 = vsel %vm1443_vm13, %v1436_v49, %v3300_v22  ;;  %v1446_v1 = vsel %vm1443_vm13, %v1436_v49, 0.0 }
 0x652   : > { %1998 = vst [vmem:[%s2822_s11 + $0x28] sm:$0xff] %v1446_v1  ;;  %1522 = vmatmul.mubr.f32.vlgmr.msra.gmra.mrb[12].mxu0 %v3348_v52  ;;  %1593 = vmatmul.mubr.f32.vlgmr.msra.gmra.mrb[12].mxu1 %v3348_v52 }
 0x653   : > { %2469 = vmatpush1.bf16.msra.mxu0 %v2836_v9  ;;  %2501 = vmatpush1.bf16.msra.mxu1 %v2863_v27  ;;  %v2000_v9 = vld [vmem:[%s2817_s6 + $0xc8] sm:$0xff] }
 0x654   : > { %2471 = vmatprep.subr.bf16.mxu0 %v2838_v10  ;;  %2503 = vmatprep.subr.bf16.mxu1 %v2878_v35 }
 0x655   : > { %1711 = vmatprep.mubr.f32.mxu0 %v2746_v8  ;;  %1782 = vmatprep.mubr.f32.mxu1 %v2746_v8  ;;  %v1999_v8 = vld [vmem:[%s2817_s6 + $0xc0] sm:$0xff] }
 0x657   : > { %2473 = vmatpush1.bf16.msra.mxu0 %v2848_v16  ;;  %2505 = vmatpush1.bf16.msra.mxu1 %v2883_v39 }
 0x658   : > { %2475 = vmatprep.subr.bf16.mxu0 %v2853_v19  ;;  %2507 = vmatprep.subr.bf16.mxu1 %v2897_v47 }
 0x65b   : > { %2477 = vmatpush1.bf16.msra.mxu0 %v2866_v28  ;;  %2509 = vmatpush1.bf16.msra.mxu1 %v2906_v50 }
 0x65c   : > { %2479 = vmatprep.subr.bf16.mxu0 %v2873_v32  ;;  %2511 = vmatprep.subr.bf16.mxu1 %v2912_v54 }
 0x65f   : > { %2481 = vmatpush1.bf16.msra.mxu0 %v2893_v44  ;;  %2513 = vmatpush1.bf16.msra.mxu1 %v2939_v0  ;;  %v2002_v44 = vld [vmem:[%s2817_s6 + $0xd8] sm:$0xff] }
 0x660   : > { %2483 = vmatprep.subr.bf16.mxu0 %v2902_v48  ;;  %2515 = vmatprep.subr.bf16.mxu1 %v2943_v2  ;;  %v2001_v48 = vld [vmem:[%s2817_s6 + $0xd0] sm:$0xff] }
 0x663   : > { %2485 = vmatpush1.bf16.msra.mxu0 %v2926_v57  ;;  %2517 = vmatpush1.bf16.msra.mxu1 %v2967_v21 }
 0x664   : > { %2487 = vmatprep.subr.bf16.mxu0 %v2933_v60  ;;  %2519 = vmatprep.subr.bf16.mxu1 %v2976_v25 }
 0x667   : > { %2489 = vmatpush1.bf16.msra.mxu0 %v2956_v13  ;;  %2521 = vmatpush1.bf16.msra.mxu1 %v2999_v41  ;;  %v1632_v41 = vpop.permute.xlu0 %1631 }
 0x668   : > { %2491 = vmatprep.subr.bf16.mxu0 %v2962_v17  ;;  %2523 = vmatprep.subr.bf16.mxu1 %v3004_v43  ;;  %vm1633_vm14 = vcmp.eq.s32.totalorder %v1632_v41, 1 }
 0x66b   : > { %2493 = vmatpush1.bf16.msra.mxu0 %v2991_v36  ;;  %2525 = vmatpush1.bf16.msra.mxu1 %v3017_v55 }
 0x66c   : > { %2495 = vmatprep.subr.bf16.mxu0 %v2994_v37  ;;  %2527 = vmatprep.subr.bf16.mxu1 %v3021_v58 }
 0x66f   : > { %2497 = vmatpush1.bf16.msra.mxu0 %v3013_v53  ;;  %2529 = vmatpush1.bf16.msra.mxu1 %v3033_v63 }
 0x725   : > { %v1523_v10 = vpop.f32.mrb[12].mxu0  ;;  %v1594_v16 = vpop.f32.mrb[12].mxu1 }
 0x726   : > { %v1599_v19 = vadd.f32 %v1999_v8, %v1523_v10  ;;  %v1525_v27 = vpop.f32.mrb[13].mxu0  ;;  %v1596_v28 = vpop.f32.mrb[13].mxu1  ;;  %v1601_v54 = vadd.f32 %v2001_v48, %v1594_v16 }
 0x727   : > { %v1600_v32 = vadd.f32 %v2000_v9, %v1525_v27  ;;  %v1602_v47 = vadd.f32 %v2002_v44, %v1596_v28 }
 0x728   : > { %v2003_v35 = vmul.f32 -1.442695, %v1599_v19 }
 0x729   : > { %v2004_v39 = vmul.f32 -1.442695, %v1600_v32  ;;  %v2005_v50 = vmul.f32 -1.442695, %v1602_v47 }
 0x72a   : > { %2673 = vpow2.f32 %v2003_v35 }
 0x72b   : > { %2675 = vpow2.f32 %v2004_v39 }
 0x72c   : > { %2677 = vpow2.f32 %v2005_v50 }
 0x72d   : > { %2679 = vtanh.f32 %v1601_v54 }
 0x734   : > { %v2674_v57 = vpop.eup %2673 }
 0x735   : > { %v2676_v60 = vpop.eup %2675  ;;  %v1606_v0 = vadd.f32 1.0, %v2674_v57 }
 0x736   : > { %v1612_v2 = vadd.f32 1.0, %v2676_v60  ;;  %v2678_v13 = vpop.eup %2677 }
 0x737   : > { %2681 = vrcp.f32 %v1606_v0  ;;  %v2680_v17 = vpop.eup %2679  ;;  %v1619_v37 = vadd.f32 1.0, %v2678_v13 }
 0x738   : > { %2683 = vrcp.f32 %v1612_v2 }
 0x739   : > { %2685 = vrcp.f32 %v1619_v37 }
 0x741   : > { %v2682_v21 = vpop.eup %2681 }
 0x742   : > { %v2684_v25 = vpop.eup %2683  ;;  %v1623_v36 = vmul.f32 %v2682_v21, %v2680_v17 }
 0x743   : > { %v1622_v43 = vmul.f32 %v2684_v25, %v3345_v46  ;;  %v2686_v58 = vpop.eup %2685 }
 0x745   : > { %v1624_v53 = vadd.f32 %v1623_v36, %v1622_v43 }
 0x747   : > { %2687 = vtanh.f32 %v1624_v53  ;;  %v1635_v55 = vsel %vm1633_vm14, %v1624_v53, %v3345_v46 }
 0x751   : > { %v2688_v63 = vpop.eup %2687 }
 0x752   : > { %v1626_v56 = vmul.f32 %v2688_v63, %v2686_v58 }
 0x754   : > { %v1634_v22 = vsel %vm1633_vm14, %v1626_v56, %v3348_v52  ;;  %v1636_v14 = vsel %vm1633_vm14, %v1626_v56, 0.0 }
 0x755   : > { %2006 = vst [vmem:[%s2822_s11 + $0x30] sm:$0xff] %v1636_v14  ;;  %1712 = vmatmul.mubr.f32.vlgmr.msra.gmra.mrb[14].mxu0 %v1634_v22  ;;  %1783 = vmatmul.mubr.f32.vlgmr.msra.gmra.mrb[14].mxu1 %v1634_v22 }
 0x828   : > { %v1713_v7 = vpop.f32.mrb[14].mxu0  ;;  %v1784_v11 = vpop.f32.mrb[14].mxu1 }
 0x829   : > { %v1789_v15 = vadd.f32 %v2007_v3, %v1713_v7  ;;  %v1715_v62 = vpop.f32.mrb[15].mxu0  ;;  %v1786_v18 = vpop.f32.mrb[15].mxu1  ;;  %v1791_v33 = vadd.f32 %v2009_v30, %v1784_v11 }
 0x82a   : > { %v1790_v20 = vadd.f32 %v2008_v6, %v1715_v62  ;;  %v1792_v29 = vadd.f32 %v2010_v4, %v1786_v18 }
 0x82b   : > { %v2011_v23 = vmul.f32 -1.442695, %v1789_v15 }
 0x82c   : > { %v2012_v26 = vmul.f32 -1.442695, %v1790_v20  ;;  %v2013_v24 = vmul.f32 -1.442695, %v1792_v29 }
 0x82d   : > { %2689 = vpow2.f32 %v2011_v23 }
 0x82e   : > { %2691 = vpow2.f32 %v2012_v26 }
 0x82f   : > { %2693 = vpow2.f32 %v2013_v24 }
 0x830   : > { %2695 = vtanh.f32 %v1791_v33 }
 0x837   : > { %v2690_v34 = vpop.eup %2689 }
 0x838   : > { %v2692_v38 = vpop.eup %2691  ;;  %v1796_v5 = vadd.f32 1.0, %v2690_v34 }
 0x839   : > { %v1802_v12 = vadd.f32 1.0, %v2692_v38  ;;  %v2694_v45 = vpop.eup %2693 }
 0x83a   : > { %2697 = vrcp.f32 %v1796_v5  ;;  %v2696_v31 = vpop.eup %2695  ;;  %v1809_v46 = vadd.f32 1.0, %v2694_v45 }
 0x83b   : > { %2699 = vrcp.f32 %v1802_v12 }
 0x83c   : > { %2701 = vrcp.f32 %v1809_v46 }
 0x844   : > { %v2698_v40 = vpop.eup %2697 }
 0x845   : > { %v2700_v51 = vpop.eup %2699  ;;  %v1813_v42 = vmul.f32 %v2698_v40, %v2696_v31 }
 0x846   : > { %v1812_v61 = vmul.f32 %v2700_v51, %v1635_v55  ;;  %v2702_v1 = vpop.eup %2701 }
 0x848   : > { %v1814_v49 = vadd.f32 %v1813_v42, %v1812_v61 }
 0x84a   : > { %2703 = vtanh.f32 %v1814_v49  ;;  %v1825_v52 = vsel %vm1823_vm15, %v1814_v49, %v1635_v55 }
 0x84b   : > { %1830 = vst [vmem:[%s3027_s7 + $0x8] sm:$0xff] %v1825_v52 }
 0x854   : > { %v2704_v8 = vpop.eup %2703 }
 0x855   : > { %v1816_v9 = vmul.f32 %v2704_v8, %v2702_v1 }
 0x857   : > { %v1824_v10 = vsel %vm1823_vm15, %v1816_v9, %v1634_v22  ;;  %v1826_v16 = vsel %vm1823_vm15, %v1816_v9, 0.0 }
 0x858   : > { %2014 = vst [vmem:[%s2822_s11 + $0x38] sm:$0xff] %v1826_v16  ;;  %1829 = vst [vmem:[%s3027_s7] sm:$0xff] %v1824_v10 }
 0x859 PF: > { %s13_s16 = sadd.s32 1, %s2743_s16   ;;  %s3419_s12 = smov %s2735_s14 }
 0x85a   : > { %p10_p9 = scmp.ge.s32.totalorder %s13_s16, 8   ;;  %s3420_s13 = smov %s2739_s15 }
 0x85b   : > { %s3421_s14 = smov %s3424_s17  ;;  %s3422_s15 = smov %s3428_s18 }
 0x85c   :  { %12 = sbr.rel (!%p10_p9) target bundleno = 3 (0x3), region = 85 }

</bundles_post_ra>
